<compile_context>
chip_gen: v7x
topology: tpu7x:2x2x1
jax: 0.10.0
libtpu: 0.0.40
codegen_flags: <defaults>
</compile_context>

<pallas_src>
import math
import functools

import jax
import jax.numpy as jnp
from jax import lax
from jax.experimental import pallas as pl
from jax.experimental.pallas import tpu as pltpu


# ----------------------------------------------------------------------------
# Pre-pass (grid = (B,)): GroupNorm stats + K / V projection per batch element.
# ----------------------------------------------------------------------------
def _gn_kv_kernel(x_ref, gb_ref, bkv_ref, gavg_ref, wk_ref, wv_ref,
                  kt_ref, vt_ref, ss_ref, *, num_heads, eps):
    C, L = x_ref.shape
    ch = C // num_heads

    x = x_ref[...]                                            # (C, L) f32

    # Two-stage GroupNorm statistics: per-channel lane reduce, then a tiny
    # group-averaging matvec (gavg[i, j] = 1/(cg*L) if same group else 0).
    s1 = jnp.sum(x, axis=1, keepdims=True)                    # (C, 1)
    s2 = jnp.sum(x * x, axis=1, keepdims=True)                # (C, 1)
    mean_c = jnp.dot(gavg_ref[...], s1, preferred_element_type=jnp.float32)
    ex2_c = jnp.dot(gavg_ref[...], s2, preferred_element_type=jnp.float32)
    var_c = jnp.maximum(ex2_c - mean_c * mean_c, 0.0)
    rstd_c = lax.rsqrt(var_c + eps)

    gamma = gb_ref[:, 0:1]
    beta = gb_ref[:, 1:2]
    scale_c = gamma * rstd_c                                  # (C, 1)
    shift_c = beta - mean_c * scale_c                         # (C, 1)
    ss_ref[:, 0:1] = scale_c
    ss_ref[:, 1:2] = shift_c

    xn = (x * scale_c + shift_c).astype(jnp.bfloat16)         # (C, L) bf16

    k = jnp.dot(wk_ref[...], xn, preferred_element_type=jnp.float32) + bkv_ref[:, 0:1]
    v = jnp.dot(wv_ref[...], xn, preferred_element_type=jnp.float32) + bkv_ref[:, 1:2]
    # Store transposed per head: (H, L, ch), the canonical flash-attention
    # operand layout for the main kernel's batched dot_generals.
    kt_ref[...] = jnp.transpose(
        k.astype(jnp.bfloat16).reshape(num_heads, ch, L), (0, 2, 1))
    vt_ref[...] = jnp.transpose(
        v.astype(jnp.bfloat16).reshape(num_heads, ch, L), (0, 2, 1))


# ----------------------------------------------------------------------------
# Main pass (grid = (B, n_query_tiles), both "parallel"): Q projection,
# online (key-chunked) softmax attention, output projection, residual add.
# ----------------------------------------------------------------------------
def _attn_kernel(x_ref, ss_ref, bqp_ref, wq_ref, wp_ref, kt_ref, vt_ref, o_ref,
                 *, kv_chunk):
    C, tq = x_ref.shape
    num_heads, L, ch = kt_ref.shape
    n_kc = L // kv_chunk

    x = x_ref[...]                                            # (C, tq) f32
    xn = (x * ss_ref[:, 0:1] + ss_ref[:, 1:2]).astype(jnp.bfloat16)

    # Q projection (attention scale folded into wq / b_q in the wrapper).
    q = jnp.dot(wq_ref[...], xn, preferred_element_type=jnp.float32) + bqp_ref[:, 0:1]
    q_t = jnp.transpose(q.astype(jnp.bfloat16).reshape(num_heads, ch, tq),
                        (0, 2, 1))                            # (H, tq, ch) bf16

    def body(kc, carry):
        m_prev, l_prev, acc_prev = carry
        start = pl.multiple_of(kc * kv_chunk, kv_chunk)
        k_c = kt_ref[:, pl.ds(start, kv_chunk), :]            # (H, Lk, ch) bf16
        v_c = vt_ref[:, pl.ds(start, kv_chunk), :]            # (H, Lk, ch) bf16
        s = lax.dot_general(q_t, k_c, (((2,), (2,)), ((0,), (0,))),
                            preferred_element_type=jnp.float32)   # (H, tq, Lk)
        m_new = jnp.maximum(m_prev, jnp.max(s, axis=-1, keepdims=True))
        alpha = jnp.exp(m_prev - m_new)
        p = jnp.exp(s - m_new)                                # fused, chunk-local
        l_new = alpha * l_prev + jnp.sum(p, axis=-1, keepdims=True)
        pv = lax.dot_general(p.astype(jnp.bfloat16), v_c,
                             (((2,), (1,)), ((0,), (0,))),
                             preferred_element_type=jnp.float32)   # (H, tq, ch)
        acc_new = alpha * acc_prev + pv
        return m_new, l_new, acc_new

    m0 = jnp.full((num_heads, tq, 1), -jnp.inf, jnp.float32)
    l0 = jnp.zeros((num_heads, tq, 1), jnp.float32)
    a0 = jnp.zeros((num_heads, tq, ch), jnp.float32)
    _, l_f, acc = lax.fori_loop(0, n_kc, body, (m0, l0, a0),
                                unroll=(n_kc <= 4))

    att = acc * pl.reciprocal(l_f, approx=True)               # (H, tq, ch) f32
    # Only the small (tq, ch) per-head result is transposed back.
    h_all = jnp.transpose(att.astype(jnp.bfloat16), (0, 2, 1)).reshape(C, tq)
    proj = (jnp.dot(wp_ref[...], h_all, preferred_element_type=jnp.float32)
            + bqp_ref[:, 1:2])
    o_ref[...] = (x + proj).astype(o_ref.dtype)


# ----------------------------------------------------------------------------
# Wrapper helpers
# ----------------------------------------------------------------------------
def _rup(v, m):
    return ((v + m - 1) // m) * m


def _vmem_budget_bytes():
    cap = 128 * 1024 * 1024
    try:
        info = pltpu.get_tpu_info()
        for name in ("vmem_capacity_bytes", "vmem_size_bytes", "vmem_bytes"):
            v = getattr(info, name, None)
            if v:
                cap = int(v)
                break
    except Exception:
        pass
    # ~20% headroom for compiler scratch; never request full physical VMEM.
    return int(cap * 0.8)


def _main_vmem_bytes(C, L, tq, lk, heads):
    f32, bf16 = 4, 2
    ch = C // heads
    chp = _rup(ch, 128)                                   # lane-padded head dim
    kv_blk = heads * L * chp * bf16
    io = 2 * (2 * C * tq * f32                            # x tile + out tile
              + 2 * kv_blk                                # K^T, V^T
              + 2 * C * C * bf16                          # w_q, w_p
              + 2 * C * 128 * f32)                        # ss + packed biases
    live = (C * tq * (bf16 + f32)                         # xn, q
            + 2 * heads * tq * chp * bf16                 # q_t, att bf16
            + 2 * heads * tq * lk * f32                   # chunk scores + probs
            + 3 * heads * tq * chp * f32                  # acc / pv / att f32
            + 2 * C * tq * f32)                           # proj + residual
    return io + live


def _prep_vmem_bytes(C, L, heads):
    f32, bf16 = 4, 2
    ch = C // heads
    chp = _rup(ch, 128)
    io = 2 * (C * L * f32                                 # x slab
              + 2 * heads * L * chp * bf16                # K^T, V^T outputs
              + 3 * C * 128 * f32                         # gb, bkv, ss
              + C * C * f32                               # group-avg matrix
              + 2 * C * C * bf16)                         # w_k, w_v
    live = (C * L * (f32 + bf16)                          # x, xn
            + 2 * C * L * f32                             # k, v f32
            + 2 * heads * L * chp * bf16)                 # transposed copies
    return io + live


def _pick_tiles(C, L, num_heads, cap):
    if L % 128 != 0:
        return L, L
    cands = [t for t in (512, 256, 128) if t <= L and L % t == 0] or [L]
    for tq in cands:                      # prefer the largest tiles that fit
        for lk in cands:
            if 2 * _main_vmem_bytes(C, L, tq, lk, num_heads) <= cap:
                return tq, lk
    return cands[-1], cands[-1]


def _prepare_params(params, C, num_heads, num_groups, L):
    """Fold the attention scale into the Q/K weights & biases, split the QKV
    conv into per-head-ordered q/k/v weights (bf16), pack biases, and build
    the group-averaging matrix used for GroupNorm statistics."""
    gamma, beta, w_qkv, b_qkv, w_proj, b_proj = params
    ch = C // num_heads
    cg = C // num_groups
    scale = 1.0 / math.sqrt(math.sqrt(ch))

    # QKVAttentionLegacy row layout: [head0: q,k,v | head1: q,k,v | ...]
    w_r = w_qkv.reshape(num_heads, 3, ch, C).astype(jnp.float32)
    b_r = b_qkv.reshape(num_heads, 3, ch).astype(jnp.float32)
    w_q = (w_r[:, 0] * scale).reshape(C, C).astype(jnp.bfloat16)
    w_k = (w_r[:, 1] * scale).reshape(C, C).astype(jnp.bfloat16)
    w_v = w_r[:, 2].reshape(C, C).astype(jnp.bfloat16)
    b_q = (b_r[:, 0] * scale).reshape(C)
    b_k = (b_r[:, 1] * scale).reshape(C)
    b_v = b_r[:, 2].reshape(C)

    gb = jnp.stack([gamma, beta], axis=1).astype(jnp.float32)        # (C, 2)
    b_kv = jnp.stack([b_k, b_v], axis=1).astype(jnp.float32)         # (C, 2)
    b_qp = jnp.stack([b_q, b_proj], axis=1).astype(jnp.float32)      # (C, 2)
    w_p = w_proj.astype(jnp.bfloat16)

    grp = jnp.repeat(jnp.arange(num_groups), cg)                     # (C,)
    gavg = ((grp[:, None] == grp[None, :]).astype(jnp.float32)
            / float(cg * L))                                         # (C, C)
    return gb, b_kv, b_qp, w_q, w_k, w_v, w_p, gavg


def attention_block_forward(x, params, *, num_heads, num_groups=32, eps=1e-5,
                            q_tile=None, kv_chunk=None):
    """x: (B, C, H, W) float32. Returns (B, C, H, W)."""
    B, C, H, W = x.shape
    L = H * W
    assert C % num_groups == 0 and C % num_heads == 0
    ch = C // num_heads
    x_flat = x.reshape(B, C, L)

    cap = _vmem_budget_bytes()
    auto_tq, auto_lk = _pick_tiles(C, L, num_heads, cap)
    if q_tile is None:
        q_tile = auto_tq
    if kv_chunk is None:
        kv_chunk = auto_lk
    assert L % q_tile == 0 and L % kv_chunk == 0
    n_qt = L // q_tile

    gb, b_kv, b_qp, w_q, w_k, w_v, w_p, gavg = _prepare_params(
        params, C, num_heads, num_groups, L)

    # ---- pre-pass: GroupNorm scale/shift + K^T / V^T per batch -------------
    prep_limit = int(min(cap, max(32 << 20,
                                  int(1.25 * _prep_vmem_bytes(C, L, num_heads)))))
    k_t, v_t, ss = pl.pallas_call(
        functools.partial(_gn_kv_kernel, num_heads=num_heads, eps=eps),
        out_shape=(jax.ShapeDtypeStruct((B, num_heads, L, ch), jnp.bfloat16),
                   jax.ShapeDtypeStruct((B, num_heads, L, ch), jnp.bfloat16),
                   jax.ShapeDtypeStruct((B, C, 2), jnp.float32)),
        grid_spec=pltpu.PrefetchScalarGridSpec(
            num_scalar_prefetch=0,
            grid=(B,),
            in_specs=[
                pl.BlockSpec((None, C, L), lambda b: (b, 0, 0)),       # x slab
                pl.BlockSpec((C, 2), lambda b: (0, 0)),                # gamma/beta
                pl.BlockSpec((C, 2), lambda b: (0, 0)),                # b_k/b_v
                pl.BlockSpec((C, C), lambda b: (0, 0)),                # group avg
                pl.BlockSpec((C, C), lambda b: (0, 0)),                # w_k
                pl.BlockSpec((C, C), lambda b: (0, 0)),                # w_v
            ],
            out_specs=[
                pl.BlockSpec((None, num_heads, L, ch), lambda b: (b, 0, 0, 0)),
                pl.BlockSpec((None, num_heads, L, ch), lambda b: (b, 0, 0, 0)),
                pl.BlockSpec((None, C, 2), lambda b: (b, 0, 0)),
            ]),
        compiler_params=pltpu.CompilerParams(
            dimension_semantics=("parallel",),
            vmem_limit_bytes=prep_limit),
    )(x_flat, gb, b_kv, gavg, w_k, w_v)

    # ---- main attention pass ------------------------------------------------
    main_limit = int(min(cap, max(32 << 20,
                                  int(1.25 * _main_vmem_bytes(C, L, q_tile,
                                                              kv_chunk,
                                                              num_heads)))))
    out = pl.pallas_call(
        functools.partial(_attn_kernel, kv_chunk=kv_chunk),
        out_shape=jax.ShapeDtypeStruct((B, C, L), x.dtype),
        grid_spec=pltpu.PrefetchScalarGridSpec(
            num_scalar_prefetch=0,
            grid=(B, n_qt),
            in_specs=[
                pl.BlockSpec((None, C, q_tile), lambda b, t: (b, 0, t)),   # x tile
                pl.BlockSpec((None, C, 2), lambda b, t: (b, 0, 0)),        # scale/shift
                pl.BlockSpec((C, 2), lambda b, t: (0, 0)),                 # b_q / b_p
                pl.BlockSpec((C, C), lambda b, t: (0, 0)),                 # w_q
                pl.BlockSpec((C, C), lambda b, t: (0, 0)),                 # w_proj
                pl.BlockSpec((None, num_heads, L, ch), lambda b, t: (b, 0, 0, 0)),  # K^T
                pl.BlockSpec((None, num_heads, L, ch), lambda b, t: (b, 0, 0, 0)),  # V^T
            ],
            out_specs=pl.BlockSpec((None, C, q_tile), lambda b, t: (b, 0, t))),
        compiler_params=pltpu.CompilerParams(
            dimension_semantics=("parallel", "parallel"),
            vmem_limit_bytes=main_limit),
    )(x_flat, ss, b_qp, w_q, w_p, k_t, v_t)

    return out.reshape(B, C, H, W)


# ----------------------------------------------------------------------------
# Deterministic parameters / pure-JAX reference
# ----------------------------------------------------------------------------
def make_params(key, channels):
    """Deterministic parameters with the module's shapes. Note: the PyTorch
    module zero-initializes proj_out (zero_module); we use small nonzero proj
    weights so the full attention path is actually validated."""
    k1, k2, k3, k4, k5, k6 = jax.random.split(key, 6)
    gamma = 1.0 + 0.1 * jax.random.normal(k1, (channels,), jnp.float32)
    beta = 0.1 * jax.random.normal(k2, (channels,), jnp.float32)
    w_qkv = 0.05 * jax.random.normal(k3, (3 * channels, channels), jnp.float32)
    b_qkv = 0.05 * jax.random.normal(k4, (3 * channels,), jnp.float32)
    w_proj = 0.05 * jax.random.normal(k5, (channels, channels), jnp.float32)
    b_proj = 0.02 * jax.random.normal(k6, (channels,), jnp.float32)
    return gamma, beta, w_qkv, b_qkv, w_proj, b_proj


def reference_forward(x, params, *, num_heads, num_groups=32, eps=1e-5):
    """Pure-JAX f32 reference mirroring the PyTorch forward."""
    B, C, H, W = x.shape
    L = H * W
    gamma, beta, w_qkv, b_qkv, w_proj, b_proj = params
    xf = x.reshape(B, C, L)
    xg = xf.reshape(B, num_groups, (C // num_groups) * L)
    mean = jnp.mean(xg, axis=-1, keepdims=True)
    var = jnp.mean((xg - mean) ** 2, axis=-1, keepdims=True)
    xn = ((xg - mean) / jnp.sqrt(var + eps)).reshape(B, C, L)
    xn = xn * gamma[None, :, None] + beta[None, :, None]
    qkv = jnp.einsum('oc,bcl->bol', w_qkv, xn) + b_qkv[None, :, None]
    ch = C // num_heads
    qkv_h = qkv.reshape(B * num_heads, 3 * ch, L)
    q, k, v = qkv_h[:, :ch], qkv_h[:, ch:2 * ch], qkv_h[:, 2 * ch:]
    scale = 1.0 / math.sqrt(math.sqrt(ch))
    w = jnp.einsum('bct,bcs->bts', q * scale, k * scale)
    w = jax.nn.softmax(w, axis=-1)
    a = jnp.einsum('bts,bcs->bct', w, v).reshape(B, C, L)
    h = jnp.einsum('oc,bcl->bol', w_proj, a) + b_proj[None, :, None]
    return (xf + h).reshape(B, C, H, W)


if __name__ == "__main__":
    B, C, H, W = 2, 64, 16, 16      # channels divisible by 32 (GroupNorm); L=256
    num_heads = 2

    key = jax.random.PRNGKey(0)
    kx, kp = jax.random.split(key)
    x = jax.random.normal(kx, (B, C, H, W), jnp.float32)
    params = make_params(kp, C)

    # Small tiles so the query-tile grid axis and the key-chunk loop are both
    # exercised (grid (2, 2), 2 key chunks per tile).
    out = attention_block_forward(x, params, num_heads=num_heads,
                                  q_tile=128, kv_chunk=128)
    out = jax.block_until_ready(out)

    ref = reference_forward(x, params, num_heads=num_heads)
    assert out.shape == (B, C, H, W)
    rel_err = float(jnp.max(jnp.abs(out - ref)) / (jnp.max(jnp.abs(ref)) + 1e-6))
    assert rel_err < 2e-2, f"mismatch vs reference: rel_err={rel_err}"

    print("KERNEL_OK")
</pallas_src>

<mosaic_0001>
module attributes {stable_mosaic.version = 11 : i64} {
  func.func @_gn_kv_kernel(%arg0: i32, %arg1: memref<1x64x256xf32, #tpu.memory_space<vmem>>, %arg2: memref<64x2xf32, #tpu.memory_space<vmem>>, %arg3: memref<64x2xf32, #tpu.memory_space<vmem>>, %arg4: memref<64x64xf32, #tpu.memory_space<vmem>>, %arg5: memref<64x64xbf16, #tpu.memory_space<vmem>>, %arg6: memref<64x64xbf16, #tpu.memory_space<vmem>>, %arg7: memref<1x2x256x32xbf16, #tpu.memory_space<vmem>>, %arg8: memref<1x2x256x32xbf16, #tpu.memory_space<vmem>>, %arg9: memref<1x64x2xf32, #tpu.memory_space<vmem>>) attributes {dimension_semantics = [#tpu.dimension_semantics<parallel>], iteration_bounds = array<i64: 2>, scalar_prefetch = 0 : i64, scratch_operands = 0 : i64, tpu.core_type = #tpu.core_type<tc>, window_params = [{transform_indices = @transform_0, window_bounds = array<i64: 1, 64, 256>}, {pipeline_mode = #tpu.pipeline_mode<synchronous>, transform_indices = @transform_1, window_bounds = array<i64: 64, 2>}, {pipeline_mode = #tpu.pipeline_mode<synchronous>, transform_indices = @transform_2, window_bounds = array<i64: 64, 2>}, {pipeline_mode = #tpu.pipeline_mode<synchronous>, transform_indices = @transform_3, window_bounds = array<i64: 64, 64>}, {pipeline_mode = #tpu.pipeline_mode<synchronous>, transform_indices = @transform_4, window_bounds = array<i64: 64, 64>}, {pipeline_mode = #tpu.pipeline_mode<synchronous>, transform_indices = @transform_5, window_bounds = array<i64: 64, 64>}, {transform_indices = @transform_6, window_bounds = array<i64: 1, 2, 256, 32>}, {transform_indices = @transform_7, window_bounds = array<i64: 1, 2, 256, 32>}, {transform_indices = @transform_8, window_bounds = array<i64: 1, 64, 2>}]} {
    %c0 = arith.constant 0 : index
    %c0_0 = arith.constant 0 : index
    %c0_1 = arith.constant 0 : index
    %0 = vector.load %arg1[%c0, %c0_0, %c0_1] : memref<1x64x256xf32, #tpu.memory_space<vmem>>, vector<1x64x256xf32>
    %1 = vector.shape_cast %0 : vector<1x64x256xf32> to vector<64x256xf32>
    %cst = arith.constant dense<0.000000e+00> : vector<64xf32>
    %2 = vector.multi_reduction <add>, %1, %cst [1] : vector<64x256xf32> to vector<64xf32>
    %3 = vector.shape_cast %2 : vector<64xf32> to vector<64x1xf32>
    %4 = arith.mulf %1, %1 : vector<64x256xf32>
    %cst_2 = arith.constant dense<0.000000e+00> : vector<64xf32>
    %5 = vector.multi_reduction <add>, %4, %cst_2 [1] : vector<64x256xf32> to vector<64xf32>
    %6 = vector.shape_cast %5 : vector<64xf32> to vector<64x1xf32>
    %c0_3 = arith.constant 0 : index
    %c0_4 = arith.constant 0 : index
    %7 = vector.load %arg4[%c0_3, %c0_4] : memref<64x64xf32, #tpu.memory_space<vmem>>, vector<64x64xf32>
    %cst_5 = arith.constant dense<0.000000e+00> : vector<64x1xf32>
    %8 = tpu.matmul %7, %3, %cst_5 {dimension_numbers = #tpu.dot_dimension_numbers<[1], [0], [0], [1], [0, 0, 1, 1], [], []>} : vector<64x64xf32>, vector<64x1xf32>, vector<64x1xf32> -> vector<64x1xf32>
    %c0_6 = arith.constant 0 : index
    %c0_7 = arith.constant 0 : index
    %9 = vector.load %arg4[%c0_6, %c0_7] : memref<64x64xf32, #tpu.memory_space<vmem>>, vector<64x64xf32>
    %cst_8 = arith.constant dense<0.000000e+00> : vector<64x1xf32>
    %10 = tpu.matmul %9, %6, %cst_8 {dimension_numbers = #tpu.dot_dimension_numbers<[1], [0], [0], [1], [0, 0, 1, 1], [], []>} : vector<64x64xf32>, vector<64x1xf32>, vector<64x1xf32> -> vector<64x1xf32>
    %11 = arith.mulf %8, %8 : vector<64x1xf32>
    %12 = arith.subf %10, %11 : vector<64x1xf32>
    %cst_9 = arith.constant 0.000000e+00 : f32
    %13 = vector.broadcast %cst_9 : f32 to vector<64x1xf32>
    %14 = arith.maximumf %12, %13 : vector<64x1xf32>
    %cst_10 = arith.constant 9.99999974E-6 : f32
    %15 = vector.broadcast %cst_10 : f32 to vector<64x1xf32>
    %16 = arith.addf %14, %15 : vector<64x1xf32>
    %17 = math.rsqrt %16 : vector<64x1xf32>
    %c0_11 = arith.constant 0 : index
    %c0_12 = arith.constant 0 : index
    %18 = vector.load %arg2[%c0_11, %c0_12] : memref<64x2xf32, #tpu.memory_space<vmem>>, vector<64x1xf32>
    %c0_13 = arith.constant 0 : index
    %c1 = arith.constant 1 : index
    %19 = vector.load %arg2[%c0_13, %c1] : memref<64x2xf32, #tpu.memory_space<vmem>>, vector<64x1xf32>
    %20 = arith.mulf %18, %17 : vector<64x1xf32>
    %21 = arith.mulf %8, %20 : vector<64x1xf32>
    %22 = arith.subf %19, %21 : vector<64x1xf32>
    %c0_14 = arith.constant 0 : index
    %c0_15 = arith.constant 0 : index
    %c0_16 = arith.constant 0 : index
    %23 = vector.load %arg9[%c0_14, %c0_15, %c0_16] : memref<1x64x2xf32, #tpu.memory_space<vmem>>, vector<1x64x1xf32>
    %24 = vector.shape_cast %23 : vector<1x64x1xf32> to vector<64x1xf32>
    %25 = vector.shape_cast %20 : vector<64x1xf32> to vector<1x64x1xf32>
    tpu.vector_store %arg9[%c0_14, %c0_15, %c0_16], %25 {strides = array<i32>} : memref<1x64x2xf32, #tpu.memory_space<vmem>>, vector<1x64x1xf32>,
    %c0_17 = arith.constant 0 : index
    %c0_18 = arith.constant 0 : index
    %c1_19 = arith.constant 1 : index
    %26 = vector.load %arg9[%c0_17, %c0_18, %c1_19] : memref<1x64x2xf32, #tpu.memory_space<vmem>>, vector<1x64x1xf32>
    %27 = vector.shape_cast %26 : vector<1x64x1xf32> to vector<64x1xf32>
    %28 = vector.shape_cast %22 : vector<64x1xf32> to vector<1x64x1xf32>
    tpu.vector_store %arg9[%c0_17, %c0_18, %c1_19], %28 {strides = array<i32>} : memref<1x64x2xf32, #tpu.memory_space<vmem>>, vector<1x64x1xf32>,
    %29 = vector.broadcast %20 : vector<64x1xf32> to vector<64x256xf32>
    %30 = arith.mulf %1, %29 : vector<64x256xf32>
    %31 = vector.broadcast %22 : vector<64x1xf32> to vector<64x256xf32>
    %32 = arith.addf %30, %31 : vector<64x256xf32>
    %33 = arith.truncf %32 : vector<64x256xf32> to vector<64x256xbf16>
    %c0_20 = arith.constant 0 : index
    %c0_21 = arith.constant 0 : index
    %34 = vector.load %arg5[%c0_20, %c0_21] : memref<64x64xbf16, #tpu.memory_space<vmem>>, vector<64x64xbf16>
    %cst_22 = arith.constant dense<0.000000e+00> : vector<64x256xf32>
    %35 = tpu.matmul %34, %33, %cst_22 {dimension_numbers = #tpu.dot_dimension_numbers<[1], [0], [0], [1], [0, 0, 1, 1], [], []>} : vector<64x64xbf16>, vector<64x256xbf16>, vector<64x256xf32> -> vector<64x256xf32>
    %c0_23 = arith.constant 0 : index
    %c0_24 = arith.constant 0 : index
    %36 = vector.load %arg3[%c0_23, %c0_24] : memref<64x2xf32, #tpu.memory_space<vmem>>, vector<64x1xf32>
    %37 = vector.broadcast %36 : vector<64x1xf32> to vector<64x256xf32>
    %38 = arith.addf %35, %37 : vector<64x256xf32>
    %c0_25 = arith.constant 0 : index
    %c0_26 = arith.constant 0 : index
    %39 = vector.load %arg6[%c0_25, %c0_26] : memref<64x64xbf16, #tpu.memory_space<vmem>>, vector<64x64xbf16>
    %cst_27 = arith.constant dense<0.000000e+00> : vector<64x256xf32>
    %40 = tpu.matmul %39, %33, %cst_27 {dimension_numbers = #tpu.dot_dimension_numbers<[1], [0], [0], [1], [0, 0, 1, 1], [], []>} : vector<64x64xbf16>, vector<64x256xbf16>, vector<64x256xf32> -> vector<64x256xf32>
    %c0_28 = arith.constant 0 : index
    %c1_29 = arith.constant 1 : index
    %41 = vector.load %arg3[%c0_28, %c1_29] : memref<64x2xf32, #tpu.memory_space<vmem>>, vector<64x1xf32>
    %42 = vector.broadcast %41 : vector<64x1xf32> to vector<64x256xf32>
    %43 = arith.addf %40, %42 : vector<64x256xf32>
    %44 = arith.truncf %38 : vector<64x256xf32> to vector<64x256xbf16>
    %45 = vector.shape_cast %44 : vector<64x256xbf16> to vector<2x32x256xbf16>
    %46 = tpu.transpose %45, [0, 2, 1] : vector<2x32x256xbf16> -> vector<2x256x32xbf16>
    %c0_30 = arith.constant 0 : index
    %c0_31 = arith.constant 0 : index
    %c0_32 = arith.constant 0 : index
    %c0_33 = arith.constant 0 : index
    %47 = vector.load %arg7[%c0_30, %c0_31, %c0_32, %c0_33] : memref<1x2x256x32xbf16, #tpu.memory_space<vmem>>, vector<1x2x256x32xbf16>
    %48 = vector.shape_cast %47 : vector<1x2x256x32xbf16> to vector<2x256x32xbf16>
    %49 = vector.shape_cast %46 : vector<2x256x32xbf16> to vector<1x2x256x32xbf16>
    tpu.vector_store %arg7[%c0_30, %c0_31, %c0_32, %c0_33], %49 {strides = array<i32>} : memref<1x2x256x32xbf16, #tpu.memory_space<vmem>>, vector<1x2x256x32xbf16>,
    %50 = arith.truncf %43 : vector<64x256xf32> to vector<64x256xbf16>
    %51 = vector.shape_cast %50 : vector<64x256xbf16> to vector<2x32x256xbf16>
    %52 = tpu.transpose %51, [0, 2, 1] : vector<2x32x256xbf16> -> vector<2x256x32xbf16>
    %c0_34 = arith.constant 0 : index
    %c0_35 = arith.constant 0 : index
    %c0_36 = arith.constant 0 : index
    %c0_37 = arith.constant 0 : index
    %53 = vector.load %arg8[%c0_34, %c0_35, %c0_36, %c0_37] : memref<1x2x256x32xbf16, #tpu.memory_space<vmem>>, vector<1x2x256x32xbf16>
    %54 = vector.shape_cast %53 : vector<1x2x256x32xbf16> to vector<2x256x32xbf16>
    %55 = vector.shape_cast %52 : vector<2x256x32xbf16> to vector<1x2x256x32xbf16>
    tpu.vector_store %arg8[%c0_34, %c0_35, %c0_36, %c0_37], %55 {strides = array<i32>} : memref<1x2x256x32xbf16, #tpu.memory_space<vmem>>, vector<1x2x256x32xbf16>,
    return
  }
  func.func @transform_0(%arg0: i32) -> (i32, i32, i32) {
    %c0_i32 = arith.constant 0 : i32
    %c0_i32_0 = arith.constant 0 : i32
    %c0_i32_1 = arith.constant 0 : i32
    return %arg0, %c0_i32, %c0_i32_0 : i32, i32, i32
  }
  func.func @transform_1(%arg0: i32) -> (i32, i32) {
    %c0_i32 = arith.constant 0 : i32
    %c0_i32_0 = arith.constant 0 : i32
    %c0_i32_1 = arith.constant 0 : i32
    return %c0_i32, %c0_i32_0 : i32, i32
  }
  func.func @transform_2(%arg0: i32) -> (i32, i32) {
    %c0_i32 = arith.constant 0 : i32
    %c0_i32_0 = arith.constant 0 : i32
    %c0_i32_1 = arith.constant 0 : i32
    return %c0_i32, %c0_i32_0 : i32, i32
  }
  func.func @transform_3(%arg0: i32) -> (i32, i32) {
    %c0_i32 = arith.constant 0 : i32
    %c0_i32_0 = arith.constant 0 : i32
    %c0_i32_1 = arith.constant 0 : i32
    return %c0_i32, %c0_i32_0 : i32, i32
  }
  func.func @transform_4(%arg0: i32) -> (i32, i32) {
    %c0_i32 = arith.constant 0 : i32
    %c0_i32_0 = arith.constant 0 : i32
    %c0_i32_1 = arith.constant 0 : i32
    return %c0_i32, %c0_i32_0 : i32, i32
  }
  func.func @transform_5(%arg0: i32) -> (i32, i32) {
    %c0_i32 = arith.constant 0 : i32
    %c0_i32_0 = arith.constant 0 : i32
    %c0_i32_1 = arith.constant 0 : i32
    return %c0_i32, %c0_i32_0 : i32, i32
  }
  func.func @transform_6(%arg0: i32) -> (i32, i32, i32, i32) {
    %c0_i32 = arith.constant 0 : i32
    %c0_i32_0 = arith.constant 0 : i32
    %c0_i32_1 = arith.constant 0 : i32
    %c0_i32_2 = arith.constant 0 : i32
    return %arg0, %c0_i32, %c0_i32_0, %c0_i32_1 : i32, i32, i32, i32
  }
  func.func @transform_7(%arg0: i32) -> (i32, i32, i32, i32) {
    %c0_i32 = arith.constant 0 : i32
    %c0_i32_0 = arith.constant 0 : i32
    %c0_i32_1 = arith.constant 0 : i32
    %c0_i32_2 = arith.constant 0 : i32
    return %arg0, %c0_i32, %c0_i32_0, %c0_i32_1 : i32, i32, i32, i32
  }
  func.func @transform_8(%arg0: i32) -> (i32, i32, i32) {
    %c0_i32 = arith.constant 0 : i32
    %c0_i32_0 = arith.constant 0 : i32
    %c0_i32_1 = arith.constant 0 : i32
    return %arg0, %c0_i32, %c0_i32_0 : i32, i32, i32
  }
}

</mosaic_0001>

<bundles_post_ra>
// kernel: tpu_custom_call.1
= control target key start
LH: loop header
LB: loop body
LE: loop exit
PB: predicated region body
PF: predicated region fallthrough
CT: control target
= control target key end

     0   :  { %14 = vsyncpa [#allocation3], 0  ;;  %s3339_s0 = inlined_call_operand.hbm [shape: f32[2,64,256], index: 0, kind: input, shape index: {}]   ;;  %s3340_s1 = inlined_call_operand.vmem [shape: f32[64,2], index: 1, kind: input, shape index: {}]   ;;  %s3341_s2 = inlined_call_operand.vmem [shape: f32[64,2], index: 2, kind: input, shape index: {}]   ;;  %s3342_s3 = inlined_call_operand.vmem [shape: f32[64,64], index: 3, kind: input, shape index: {}]   ;;  %s3343_s4 = inlined_call_operand.vmem [shape: bf16[64,64], index: 4, kind: input, shape index: {}]   ;;  %s3344_s5 = inlined_call_operand.vmem [shape: bf16[64,64], index: 5, kind: input, shape index: {}]   ;;  %s3345_s6 = inlined_call_operand.vmem [shape: bf16[2,2,256,32], index: 6, kind: output, shape index: {0}]   ;;  %s3346_s7 = inlined_call_operand.vmem [shape: bf16[2,2,256,32], index: 7, kind: output, shape index: {1}]   ;;  %s3347_s8 = inlined_call_operand.vmem [shape: f32[2,64,2], index: 8, kind: output, shape index: {2}]  }
   0x1   :  { %16 = vsyncpa [#allocation3 + $0x1], 0  ;;  %s2570_s27 = smov 0   ;;  %s2572_s28 = smov 0  }
   0x2   :  { %s2574_s29 = smov 0   ;;  %s2576_s30 = smov 0  }
   0x3 LB: > { %s2589_s9 = sadd.s32 4294967295, %s2517_s30   ;;  %s2592_s10 = sadd.s32 1, %s2517_s30   ;;  %s2517_s30 = sphi %s2576_s30, %s3354_s30   ;;  %s2513_s29 = sphi %s2574_s29, %s3353_s29   ;;  %s2509_s28 = sphi %s2572_s28, %s3352_s28   ;;  %s2505_s27 = sphi %s2570_s27, %s3351_s27  }
   0x4   : > { %s26_s11 = ssub.s32 %s2517_s30, %s2592_s10  ;;  %s29_s12 = sadd.s32 1, %s2513_s29 }
   0x5   : > { %p27_p0 = scmp.eq.s32.totalorder %s26_s11, 0  ;;  %p36_p1 = scmp.ne.s32.totalorder %s2513_s29, %s2509_s28 }
   0x6   : > { %p37_p2 = scmp.eq.s32.totalorder %s2517_s30, 0  ;;  %p42_p3 = scmp.ne.s32.totalorder %s2509_s28, %s2505_s27 }
   0x7   : > { %s2602_s13 = scalar_select %p27_p0, %s2513_s29, %s29_s12  }
   0x8   : > { %p38_p4 = por %p37_p2, %p36_p1  ;;  %p43_p5 = scmp.eq.s32.totalorder %s2589_s9, 0 }
   0x9   : > { %p2383_p6 = scmp.lt.s32.totalorder %s2517_s30, 2  ;;  %s264_s15 = sand.u32 1, %s2513_s29  }
   0xa   : > { %p2606_p7 = por %p43_p5, %p42_p3  ;;  %s2080_s16 = sshll.u32 %s264_s15, 7 }
   0xb   : > { %s2253_s17 = sshll.u32 %s2517_s30, 11  ;;  %s268_s21 = scalar_lea.vmem [#allocation2], %s2080_s16 }
   0xc   : > { %s2615_s20 = scalar_lea.hbm %s3339_s0, %s2253_s17  ;;  %s275_s22 = sshll.u32 %s268_s21, 4  ;;  %s2617_s22 = int_to_ptr.vmem [resolvable:$true] %s275_s22 }
   0xd   : > { %p2619_p8 = pnand %p2383_p6, %p38_p4  ;;  %s2624_s24 = scalar_lea.sflag [#allocation3], %s264_s15 }
   0xe   : > { %s2453_s25 = scalar_lea.hbm %s2615_s20, 2048  ;;  %s2458_s11 = scalar_lea.hbm %s3339_s0, 4096 }
   0xf   : > { %p2454_p10 = scmp.ne.s32.totalorder %s2615_s20, %s2453_s25  ;;  %p2455_p11 = pneg %p2619_p8 }
  0x10   : > { %p2459_p0 = scmp.lt.u32.totalorder %s2615_s20, %s3339_s0  ;;  %p2460_p1 = scmp.lt.u32.totalorder %s2458_s11, %s2453_s25 }
  0x11   : > { %p2456_p12 = pnand %p2455_p11, %p2454_p10  ;;  %p2462_p3 = scmp.lt.u32.totalorder %s2453_s25, %s2615_s20 }
  0x12   : > { %p2461_p2 = por %p2460_p1, %p2459_p0 }
  0x13   : > { %p2457_p13 = pneg %p2456_p12 }
  0x14   : > { %p2463_p4 = por %p2462_p3, %p2461_p2 }
  0x16   : > { %p2464_p5 = pnand %p2463_p4, %p2457_p13 }
  0x18   : > { %2467 = shalt.err (!%p2464_p5)
}
  0x19   : > { %s2468_s15 = scalar_lea.vmem %s2617_s22, 2048  ;;  %s2519_s17 = smov [#allocation2]  }
  0x1a   : > { %p2469_p6 = scmp.ne.s32.totalorder %s2617_s22, %s2468_s15  ;;  %s2473_s18 = sshll.u32 %s2519_s17, 4  ;;  %s2474_s18 = int_to_ptr.vmem [resolvable:$false] %s2473_s18 }
  0x1b   : > { %s2475_s19 = scalar_lea.vmem %s2474_s18, 4096  ;;  %p2476_p9 = scmp.lt.s32.totalorder %s2617_s22, %s2474_s18 }
  0x1c   : > { %p2471_p10 = pnand %p2469_p6, %p2455_p11  ;;  %p2477_p0 = scmp.lt.s32.totalorder %s2475_s19, %s2468_s15 }
  0x1e   : > { %p2472_p12 = pneg %p2471_p10  ;;  %p2478_p1 = por %p2477_p0, %p2476_p9 }
  0x20   : > { %p2479_p2 = pnand %p2478_p1, %p2472_p12 }
  0x22   : > { %2482 = shalt.err (!%p2479_p2)
}
  0x23   : > { %s2520_s21 = smov 256   ;;  %s2521_s25 = smov 16  }
  0x24   : > { %2382 = dma.hbm_to_vmem [thread:$0]  (!%p2619_p8), %s2615_s20, 2048, %s2617_s22, %s2624_s24, %s2520_s21, %s2520_s21, %s2521_s25  }
  0x25   : > { %p283_p11 = scmp.lt.s32.totalorder %s2517_s30, 3  ;;  %p3350_p13 = scmp.ge.s32.totalorder %s2517_s30, 1 }
  0x27   : > { %p284_p3 = pnand %p3350_p13, %p283_p11 }
  0x28   : > { %s289_s26 = sand.u32 (!%p284_p3), 1, %s2509_s28  }
  0x29   : > { %287 = sbr.rel (%p284_p3) target bundleno = 1184 (0x4a0), region = 44  ;;  %s2084_s27 = sshll.u32 (!%p284_p3), %s289_s26, 7 }
  0x2a   : > { %s290_s11 = scalar_lea.sflag (!%p284_p3), [#allocation3], %s289_s26  ;;  %s2656_s12 = scalar_lea.vmem (!%p284_p3), [#allocation2], %s2084_s27 }
  0x30   : > { %2500 = dma.done.wait (%p2606_p7), %s290_s11, 2048  }
  0x31   : > { %2502 = vsyncadd (%p2606_p7), %s290_s11, 4294965248  ;;  %v2663_v0 = vld [vmem:[%s2656_s12 + $0x30] sm:$0xff]  ;;  %v2666_v1 = vld [vmem:[%s2656_s12 + $0x38] sm:$0xff]  ;;  %vm440_vm0 = vcmask 523264   ;;  %p336_p7 = scmp.lt.s32.totalorder %s2589_s9, 1  ;;  %vm779_vm1 = vcmask 7168  }
  0x32   : > { %v2669_v2 = vld [vmem:[%s2656_s12] sm:$0xff]  ;;  %v377_v3 = vadd.f32 %v2666_v1, %v2663_v0  ;;  %v2674_v4 = vld [vmem:[%s2656_s12 + $0x8] sm:$0xff]  ;;  %v2679_v6 = vld [vmem:[%s2656_s12 + $0x10] sm:$0xff]  ;;  %v398_v17 = vmul.f32 %v2663_v0, %v2663_v0  ;;  %v399_v18 = vmul.f32 %v2666_v1, %v2666_v1  ;;  %s2523_s21 = smov 1   ;;  %vm788_vm2 = vcmask 15368  }
  0x33   : > { %v392_v5 = vmul.f32 %v2669_v2, %v2669_v2  ;;  %v2682_v7 = vld [vmem:[%s2656_s12 + $0x18] sm:$0xff]  ;;  %v368_v8 = vadd.f32 %v2674_v4, %v2669_v2  ;;  %v393_v9 = vmul.f32 %v2674_v4, %v2674_v4  ;;  %v394_v10 = vmul.f32 %v2679_v6, %v2679_v6  ;;  %v2695_v14 = vld [vmem:[%s2656_s12 + $0x20] sm:$0xff]  ;;  %v2698_v15 = vld [vmem:[%s2656_s12 + $0x28] sm:$0xff]  ;;  %s3356_s9 = smov (!%p336_p7, %s2589_s9), 1 }
  0x34   : > { %378 = vadd.xlane.f32.xlu1 %v377_v3  ;;  %v395_v11 = vmul.f32 %v2682_v7, %v2682_v7  ;;  %v371_v13 = vadd.f32 %v2682_v7, %v2679_v6  ;;  %v374_v19 = vadd.f32 %v2698_v15, %v2695_v14  ;;  %v396_v20 = vmul.f32 %v2695_v14, %v2695_v14  ;;  %v2711_v24 = vld [vmem:[%s2656_s12 + $0x50] sm:$0xff]  ;;  %v2714_v25 = vld [vmem:[%s2656_s12 + $0x58] sm:$0xff]  ;;  %v2717_v26 = vld [vmem:[%s2656_s12 + $0x40] sm:$0xff]  ;;  %s2254_s14 = sshll.u32 %s3356_s9, 8 }
  0x35   : > { %369 = vadd.xlane.f32.xlu0 %v368_v8  ;;  %v408_v12 = vadd.f32 %v393_v9, %v392_v5  ;;  %v397_v21 = vmul.f32 %v2698_v15, %v2698_v15  ;;  %v417_v22 = vadd.f32 %v399_v18, %v398_v17  ;;  %v2720_v27 = vld [vmem:[%s2656_s12 + $0x48] sm:$0xff]  ;;  %v383_v28 = vadd.f32 %v2714_v25, %v2711_v24  ;;  %v2735_v36 = vld [vmem:[%s2656_s12 + $0x70] sm:$0xff]  ;;  %v2738_v37 = vld [vmem:[%s2656_s12 + $0x78] sm:$0xff]  ;;  %s3061_s23 = scalar_lea.vmem %s3345_s6, %s2254_s14  ;;  %s3128_s17 = scalar_lea.vmem %s3346_s7, %s2254_s14 }
  0x36   : > { %v411_v16 = vadd.f32 %v395_v11, %v394_v10  ;;  %v402_v29 = vmul.f32 %v2711_v24, %v2711_v24  ;;  %v403_v30 = vmul.f32 %v2714_v25, %v2714_v25  ;;  %v380_v31 = vadd.f32 %v2720_v27, %v2717_v26  ;;  %v2741_v38 = vld [vmem:[%s2656_s12 + $0x60] sm:$0xff]  ;;  %v2744_v39 = vld [vmem:[%s2656_s12 + $0x68] sm:$0xff]  ;;  %v434_v18 = vld [vmem:[%s3342_s3 + $0x10] sm:$0xff]  ;;  %s2256_s12 = sshll.u32 %s3356_s9, 6 }
  0x37   : > { %v414_v23 = vadd.f32 %v397_v21, %v396_v20  ;;  %v400_v32 = vmul.f32 %v2717_v26, %v2717_v26  ;;  %v401_v33 = vmul.f32 %v2720_v27, %v2720_v27  ;;  %v389_v40 = vadd.f32 %v2738_v37, %v2735_v36  ;;  %v432_v48 = vld [vmem:[%s3342_s3] sm:$0xff]  ;;  %v437_v21 = vld [vmem:[%s3342_s3 + $0x28] sm:$0xff]  ;;  %s2854_s16 = scalar_lea.vmem %s3347_s8, %s2256_s12 }
  0x38   : > { %409 = vadd.xlane.f32.xlu1 %v408_v12  ;;  %v423_v34 = vadd.f32 %v403_v30, %v402_v29  ;;  %v406_v41 = vmul.f32 %v2735_v36, %v2735_v36  ;;  %v407_v42 = vmul.f32 %v2738_v37, %v2738_v37  ;;  %v386_v43 = vadd.f32 %v2744_v39, %v2741_v38  ;;  %v436_v20 = vld [vmem:[%s3342_s3 + $0x20] sm:$0xff] }
  0x39   : > { %372 = vadd.xlane.f32.xlu0 %v371_v13  ;;  %v420_v35 = vadd.f32 %v401_v33, %v400_v32  ;;  %v404_v44 = vmul.f32 %v2741_v38, %v2741_v38  ;;  %v405_v45 = vmul.f32 %v2744_v39, %v2744_v39  ;;  %2305 = vmatprep.mubr.msk.f32.mxu0 %vm440_vm0, %v432_v48  ;;  %vm1519_vm3 = vcmask 257024  }
  0x3a   : > { %v429_v46 = vadd.f32 %v407_v42, %v406_v41  ;;  %2333 = vmatprep.mubr.msk.f32.mxu1 %vm440_vm0, %v432_v48 }
  0x3b   : > { %v426_v47 = vadd.f32 %v405_v45, %v404_v44 }
  0x3c   : > { %412 = vadd.xlane.f32.xlu1 %v411_v16  ;;  %v433_v16 = vld [vmem:[%s3342_s3 + $0x8] sm:$0xff] }
  0x3d   : > { %375 = vadd.xlane.f32.xlu0 %v374_v19  ;;  %v435_v19 = vld [vmem:[%s3342_s3 + $0x18] sm:$0xff] }
  0x40   : > { %418 = vadd.xlane.f32.xlu1 %v417_v22  ;;  %v438_v22 = vld [vmem:[%s3342_s3 + $0x30] sm:$0xff] }
  0x41   : > { %415 = vadd.xlane.f32.xlu0 %v414_v23  ;;  %v439_v23 = vld [vmem:[%s3342_s3 + $0x38] sm:$0xff] }
  0x44   : > { %384 = vadd.xlane.f32.xlu1 %v383_v28  ;;  %v2522_v28 = vmov 0  }
  0x45   : > { %381 = vadd.xlane.f32.xlu0 %v380_v31  ;;  %2422 = vset.pattern.permute.xlu1 %v2522_v28 }
  0x46   : > { %2421 = vset.pattern.permute.xlu0 %v2522_v28 }
  0x48   : > { %424 = vadd.xlane.f32.xlu1 %v423_v34 }
  0x49   : > { %421 = vadd.xlane.f32.xlu0 %v420_v35 }
  0x4c   : > { %390 = vadd.xlane.f32.xlu1 %v389_v40 }
  0x4d   : > { %387 = vadd.xlane.f32.xlu0 %v386_v43 }
  0x50   : > { %430 = vadd.xlane.f32.xlu1 %v429_v46 }
  0x51   : > { %427 = vadd.xlane.f32.xlu0 %v426_v47 }
  0xc1   : > { %v379_v49 = vpop.xlane.xlu1 %378 }
  0xc2   : > { %v370_v50 = vpop.xlane.xlu0 %369 }
  0xc5   : > { %v410_v51 = vpop.xlane.xlu1 %409 }
  0xc6   : > { %v373_v52 = vpop.xlane.xlu0 %372 }
  0xc7   : > { %v2345_v53 = vpack.c.bf16 %v373_v52, %v370_v50 }
  0xc9   : > { %2346 = vmatprep.subr.bf16.mxu0 %v2345_v53  ;;  %v413_v54 = vpop.xlane.xlu1 %412 }
  0xca   : > { %v2361_v55 = vpack.c.bf16 %v413_v54, %v410_v51  ;;  %2348 = vmatpush3.bf16.msra.mxu0 %v2345_v53  ;;  %v376_v56 = vpop.xlane.xlu0 %375 }
  0xcb   : > { %v2349_v57 = vpack.c.bf16 %v379_v49, %v376_v56 }
  0xcc   : > { %2362 = vmatprep.subr.bf16.mxu1 %v2361_v55 }
  0xcd   : > { %2350 = vmatprep.subr.bf16.mxu0 %v2349_v57  ;;  %2364 = vmatpush3.bf16.msra.mxu1 %v2361_v55  ;;  %v419_v58 = vpop.xlane.xlu1 %418 }
  0xce   : > { %2352 = vmatpush3.bf16.msra.mxu0 %v2349_v57  ;;  %v416_v59 = vpop.xlane.xlu0 %415 }
  0xcf   : > { %v2365_v60 = vpack.c.bf16 %v419_v58, %v416_v59 }
  0xd1   : > { %2366 = vmatprep.subr.bf16.mxu1 %v2365_v60  ;;  %v385_v61 = vpop.xlane.xlu1 %384 }
  0xd2   : > { %2368 = vmatpush3.bf16.msra.mxu1 %v2365_v60  ;;  %v382_v62 = vpop.xlane.xlu0 %381 }
  0xd3   : > { %v2353_v63 = vpack.c.bf16 %v385_v61, %v382_v62 }
  0xd5   : > { %2354 = vmatprep.subr.bf16.mxu0 %v2353_v63  ;;  %v425_v3 = vpop.xlane.xlu1 %424 }
  0xd6   : > { %2356 = vmatpush3.bf16.msra.mxu0 %v2353_v63  ;;  %v422_v5 = vpop.xlane.xlu0 %421 }
  0xd7   : > { %v2369_v8 = vpack.c.bf16 %v425_v3, %v422_v5 }
  0xd9   : > { %2370 = vmatprep.subr.bf16.mxu1 %v2369_v8  ;;  %v391_v9 = vpop.xlane.xlu1 %390 }
  0xda   : > { %2372 = vmatpush3.bf16.msra.mxu1 %v2369_v8  ;;  %v388_v10 = vpop.xlane.xlu0 %387 }
  0xdb   : > { %v2357_v11 = vpack.c.bf16 %v391_v9, %v388_v10 }
  0xdd   : > { %2358 = vmatprep.subr.bf16.mxu0 %v2357_v11  ;;  %v431_v12 = vpop.xlane.xlu1 %430 }
  0xde   : > { %2360 = vmatpush3.bf16.msra.mxu0 %v2357_v11  ;;  %v428_v13 = vpop.xlane.xlu0 %427 }
  0xdf   : > { %v2373_v17 = vpack.c.bf16 %v431_v12, %v428_v13 }
  0xe1   : > { %2374 = vmatprep.subr.bf16.mxu1 %v2373_v17  ;;  %2306 = vmatmul.mubr.msk.f32.vlgmr.msra.gmra.mrb[0].mxu0 %vm440_vm0, %v433_v16 }
  0xe2   : > { %2376 = vmatpush3.bf16.msra.mxu1 %v2373_v17  ;;  %2308 = vmatprep.mubr.msk.f32.mxu0 %vm440_vm0, %v434_v18 }
  0xe5   : > { %2334 = vmatmul.mubr.msk.f32.vlgmr.msra.gmra.mrb[0].mxu1 %vm440_vm0, %v433_v16  ;;  %2309 = vmatmul.mubr.msk.f32.gmra.mrb[2].mxu0 %vm440_vm0, %v435_v19 }
  0xe6   : > { %2336 = vmatprep.mubr.msk.f32.mxu1 %vm440_vm0, %v434_v18  ;;  %2311 = vmatprep.mubr.msk.f32.mxu0 %vm440_vm0, %v436_v20 }
  0xe9   : > { %2337 = vmatmul.mubr.msk.f32.gmra.mrb[2].mxu1 %vm440_vm0, %v435_v19  ;;  %2312 = vmatmul.mubr.msk.f32.gmra.mrb[4].mxu0 %vm440_vm0, %v437_v21 }
  0xea   : > { %2339 = vmatprep.mubr.msk.f32.mxu1 %vm440_vm0, %v436_v20  ;;  %2314 = vmatprep.mubr.msk.f32.mxu0 %vm440_vm0, %v438_v22 }
  0xed   : > { %2340 = vmatmul.mubr.msk.f32.gmra.mrb[4].mxu1 %vm440_vm0, %v437_v21  ;;  %2315 = vmatmul.mubr.msk.f32.gmra.mrb[6].mxu0 %vm440_vm0, %v439_v23 }
  0xee   : > { %2342 = vmatprep.mubr.msk.f32.mxu1 %vm440_vm0, %v438_v22  ;;  %1037 = vmatprep.mubr.bf16.mxu0 %v2522_v28  ;;  %v2844_v22 = vld [vmem:[%s3340_s1 + $0x8] sm:$0xff] }
  0xf1   : > { %2343 = vmatmul.mubr.msk.f32.gmra.mrb[6].mxu1 %vm440_vm0, %v439_v23 }
  0xf2   : > { %1182 = vmatprep.mubr.bf16.mxu1 %v2522_v28 }
 0x1b4   : > { %v2802_v29 = vpop.f32.mrb[0].mxu0 }
 0x1b5   : > { %v676_v30 = vmul.f32 %v2802_v29, %v2802_v29  ;;  %v2806_v31 = vpop.f32.mrb[1].mxu0 }
 0x1b6   : > { %v675_v32 = vmul.f32 %v2806_v31, %v2806_v31 }
 0x1b8   : > { %v2335_v33 = vpop.f32.mrb[0].mxu1  ;;  %v2810_v34 = vpop.f32.mrb[2].mxu0 }
 0x1b9   : > { %v684_v35 = vsub.f32 %v2335_v33, %v676_v30  ;;  %v678_v40 = vmul.f32 %v2810_v34, %v2810_v34  ;;  %v636_v41 = vpop.f32.mrb[1].mxu1  ;;  %v2814_v42 = vpop.f32.mrb[3].mxu0  ;;  %v2849_v30 = vld [vmem:[%s3340_s1] sm:$0xff] }
 0x1ba   : > { %v683_v43 = vsub.f32 %v636_v41, %v675_v32  ;;  %v677_v44 = vmul.f32 %v2814_v42, %v2814_v42 }
 0x1bb   : > { %v692_v45 = vmax.f32 %v684_v35, 0.0 }
 0x1bc   : > { %v691_v46 = vmax.f32 %v683_v43, 0.0  ;;  %v2338_v47 = vpop.f32.mrb[2].mxu1  ;;  %v2818_v48 = vpop.f32.mrb[4].mxu0 }
 0x1bd   : > { %v700_v49 = vadd.f32 1e-05, %v692_v45  ;;  %v686_v50 = vsub.f32 %v2338_v47, %v678_v40  ;;  %v646_v51 = vpop.f32.mrb[3].mxu1  ;;  %v680_v52 = vmul.f32 %v2818_v48, %v2818_v48  ;;  %v2822_v53 = vpop.f32.mrb[5].mxu0 }
 0x1be   : > { %v699_v54 = vadd.f32 1e-05, %v691_v46  ;;  %v685_v55 = vsub.f32 %v646_v51, %v677_v44  ;;  %v679_v56 = vmul.f32 %v2822_v53, %v2822_v53  ;;  %v2861_v44 = vld [vmem:[%s3340_s1 + $0x18] sm:$0xff]  ;;  %v2869_v46 = vld [vmem:[%s3340_s1 + $0x10] sm:$0xff] }
 0x1bf   : > { %2437 = vrsqrt.f32 %v700_v49  ;;  %v694_v57 = vmax.f32 %v686_v50, 0.0 }
 0x1c0   : > { %2439 = vrsqrt.f32 %v699_v54  ;;  %v693_v58 = vmax.f32 %v685_v55, 0.0  ;;  %v2341_v59 = vpop.f32.mrb[4].mxu1  ;;  %v2827_v60 = vpop.f32.mrb[6].mxu0  ;;  %v719_v54 = vld [vmem:[%s3340_s1 + $0x20] sm:$0xff] }
 0x1c1   : > { %v702_v61 = vadd.f32 1e-05, %v694_v57  ;;  %v688_v62 = vsub.f32 %v2341_v59, %v680_v52  ;;  %v656_v63 = vpop.f32.mrb[5].mxu1  ;;  %v682_v3 = vmul.f32 %v2827_v60, %v2827_v60  ;;  %v2831_v5 = vpop.f32.mrb[7].mxu0  ;;  %v2881_v52 = vld [vmem:[%s3340_s1 + $0x28] sm:$0xff] }
 0x1c2   : > { %v701_v8 = vadd.f32 1e-05, %v693_v58  ;;  %v687_v9 = vsub.f32 %v656_v63, %v679_v56  ;;  %v681_v10 = vmul.f32 %v2831_v5, %v2831_v5 }
 0x1c3   : > { %2441 = vrsqrt.f32 %v702_v61  ;;  %v696_v11 = vmax.f32 %v688_v62, 0.0 }
 0x1c4   : > { %2443 = vrsqrt.f32 %v701_v8  ;;  %v695_v12 = vmax.f32 %v687_v9, 0.0  ;;  %v2344_v13 = vpop.f32.mrb[6].mxu1 }
 0x1c5   : > { %v704_v16 = vadd.f32 1e-05, %v696_v11  ;;  %v690_v17 = vsub.f32 %v2344_v13, %v682_v3  ;;  %v666_v18 = vpop.f32.mrb[7].mxu1 }
 0x1c6   : > { %v703_v19 = vadd.f32 1e-05, %v695_v12  ;;  %v689_v20 = vsub.f32 %v666_v18, %v681_v10 }
 0x1c7   : > { %2445 = vrsqrt.f32 %v704_v16  ;;  %v698_v21 = vmax.f32 %v690_v17, 0.0 }
 0x1c8   : > { %2447 = vrsqrt.f32 %v703_v19  ;;  %v697_v23 = vmax.f32 %v689_v20, 0.0 }
 0x1c9   : > { %v2438_v32 = vpop.eup %2437  ;;  %v706_v33 = vadd.f32 1e-05, %v698_v21 }
 0x1ca   : > { %v2440_v35 = vpop.eup %2439  ;;  %v705_v40 = vadd.f32 1e-05, %v697_v23  ;;  %v724_v41 = vmul.f32 %v2438_v32, %v2844_v22 }
 0x1cb   : > { %2449 = vrsqrt.f32 %v706_v33  ;;  %v723_v43 = vmul.f32 %v2440_v35, %v2849_v30  ;;  %v926_v35 = vld [vmem:[%s3341_s2 + $0x8] sm:$0xff] }
 0x1cc   : > { %2451 = vrsqrt.f32 %v705_v40  ;;  %v732_v45 = vmul.f32 %v2802_v29, %v724_v41  ;;  %781 = vst.msk [vmem:[%s2854_s16 + $0x8] sm:$0xff] %vm779_vm1, %v724_v41  ;;  %v925_v40 = vld [vmem:[%s3341_s2] sm:$0xff] }
 0x1cd   : > { %v2442_v47 = vpop.eup %2441  ;;  %v731_v49 = vmul.f32 %v723_v43, %v2806_v31  ;;  %780 = vst.msk [vmem:[%s2854_s16] sm:$0xff] %vm779_vm1, %v723_v43 }
 0x1ce   : > { %v2444_v50 = vpop.eup %2443  ;;  %749 = vrot.lane.b32.xlu1 %v732_v45, %s2523_s21  ;;  %v726_v51 = vmul.f32 %v2442_v47, %v2861_v44  ;;  %v930_v45 = vld [vmem:[%s3341_s2 + $0x28] sm:$0xff]  ;;  %v932_v47 = vld [vmem:[%s3341_s2 + $0x38] sm:$0xff] }
 0x1cf   : > { %747 = vrot.lane.b32.xlu0 %v731_v49, %s2523_s21  ;;  %v725_v29 = vmul.f32 %v2444_v50, %v2869_v46 }
 0x1d0   : > { %v734_v31 = vmul.f32 %v2810_v34, %v726_v51  ;;  %783 = vst.msk [vmem:[%s2854_s16 + $0x18] sm:$0xff] %vm779_vm1, %v726_v51  ;;  %v722_v34 = vld [vmem:[%s3340_s1 + $0x38] sm:$0xff] }
 0x1d1   : > { %v2446_v55 = vpop.eup %2445  ;;  %v733_v56 = vmul.f32 %v725_v29, %v2814_v42  ;;  %782 = vst.msk [vmem:[%s2854_s16 + $0x10] sm:$0xff] %vm779_vm1, %v725_v29  ;;  %v721_v42 = vld [vmem:[%s3340_s1 + $0x30] sm:$0xff] }
 0x1d2   : > { %v2448_v57 = vpop.eup %2447  ;;  %753 = vrot.lane.b32.xlu1 %v734_v31, %s2523_s21  ;;  %v728_v58 = vmul.f32 %v2446_v55, %v2881_v52 }
 0x1d3   : > { %v727_v59 = vmul.f32 %v2448_v57, %v719_v54 }
 0x1d4   : > { %v736_v61 = vmul.f32 %v2818_v48, %v728_v58  ;;  %785 = vst.msk [vmem:[%s2854_s16 + $0x28] sm:$0xff] %vm779_vm1, %v728_v58 }
 0x1d5   : > { %v2450_v62 = vpop.eup %2449  ;;  %v735_v63 = vmul.f32 %v727_v59, %v2822_v53  ;;  %784 = vst.msk [vmem:[%s2854_s16 + $0x20] sm:$0xff] %vm779_vm1, %v727_v59  ;;  %v2524_v53 = vmov 1  }
 0x1d6   : > { %v2452_v3 = vpop.eup %2451  ;;  %751 = vrot.lane.b32.xlu1 %v733_v56, %s2523_s21  ;;  %v730_v8 = vmul.f32 %v2450_v62, %v722_v34 }
 0x1d7   : > { %755 = vrot.lane.b32.xlu0 %v735_v63, %s2523_s21  ;;  %v729_v9 = vmul.f32 %v2452_v3, %v721_v42 }
 0x1d8   : > { %v738_v48 = vmul.f32 %v2827_v60, %v730_v8  ;;  %787 = vst.msk [vmem:[%s2854_s16 + $0x38] sm:$0xff] %vm779_vm1, %v730_v8 }
 0x1d9   : > { %v737_v10 = vmul.f32 %v729_v9, %v2831_v5  ;;  %786 = vst.msk [vmem:[%s2854_s16 + $0x30] sm:$0xff] %vm779_vm1, %v729_v9 }
 0x1da   : > { %757 = vrot.lane.b32.xlu1 %v736_v61, %s2523_s21 }
 0x1db   : > { %759 = vrot.lane.b32.xlu0 %v737_v10, %s2523_s21 }
 0x1de   : > { %761 = vrot.lane.b32.xlu1 %v738_v48, %s2523_s21 }
 0x1df   : > { %799 = vperm.xlu0 %2421, %v723_v43   ;;  %v928_v43 = vld [vmem:[%s3341_s2 + $0x18] sm:$0xff] }
 0x1e2   : > { %804 = vperm.xlu1 %2422, %v724_v41   ;;  %v927_v41 = vld [vmem:[%s3341_s2 + $0x10] sm:$0xff] }
 0x1e3   : > { %819 = vperm.xlu0 %2421, %v727_v59  }
 0x1e6   : > { %809 = vperm.xlu1 %2422, %v725_v29  }
 0x1e7   : > { %2423 = vset.pattern.permute.xlu0 %v2524_v53 }
 0x1ea   : > { %814 = vperm.xlu1 %2422, %v726_v51  }
 0x1ee   : > { %824 = vperm.xlu1 %2422, %v728_v58  }
 0x1f2   : > { %829 = vperm.xlu1 %2422, %v729_v9  }
 0x1f6   : > { %834 = vperm.xlu1 %2422, %v730_v8  }
 0x1fa   : > { %2424 = vset.pattern.permute.xlu1 %v2524_v53 }
 0x240   : > { %v750_v60 = vpop.permute.xlu1 %749 }
 0x241   : > { %v772_v5 = vsub.f32 %v2844_v22, %v750_v60  ;;  %v748_v11 = vpop.permute.xlu0 %747 }
 0x242   : > { %v771_v12 = vsub.f32 %v2849_v30, %v748_v11 }
 0x243   : > { %790 = vst.msk [vmem:[%s2854_s16 + $0x8] sm:$0xff] %vm788_vm2, %v772_v5  ;;  %860 = vperm.xlu0 %2423, %v772_v5  }
 0x244   : > { %789 = vst.msk [vmem:[%s2854_s16] sm:$0xff] %vm788_vm2, %v771_v12  ;;  %v754_v13 = vpop.permute.xlu1 %753  ;;  %855 = vperm.xlu1 %2424, %v771_v12  }
 0x245   : > { %v774_v16 = vsub.f32 %v2861_v44, %v754_v13  ;;  %v929_v44 = vld [vmem:[%s3341_s2 + $0x20] sm:$0xff] }
 0x247   : > { %792 = vst.msk [vmem:[%s2854_s16 + $0x18] sm:$0xff] %vm788_vm2, %v774_v16 }
 0x248   : > { %v752_v17 = vpop.permute.xlu1 %751  ;;  %870 = vperm.xlu1 %2424, %v774_v16  }
 0x249   : > { %v773_v18 = vsub.f32 %v2869_v46, %v752_v17  ;;  %v756_v19 = vpop.permute.xlu0 %755  ;;  %v931_v46 = vld [vmem:[%s3341_s2 + $0x30] sm:$0xff] }
 0x24a   : > { %v775_v20 = vsub.f32 %v719_v54, %v756_v19 }
 0x24b   : > { %791 = vst.msk [vmem:[%s2854_s16 + $0x10] sm:$0xff] %vm788_vm2, %v773_v18  ;;  %865 = vperm.xlu0 %2423, %v773_v18  }
 0x24c   : > { %793 = vst.msk [vmem:[%s2854_s16 + $0x20] sm:$0xff] %vm788_vm2, %v775_v20  ;;  %v758_v21 = vpop.permute.xlu1 %757  ;;  %875 = vperm.xlu1 %2424, %v775_v20  }
 0x24d   : > { %v776_v22 = vsub.f32 %v2881_v52, %v758_v21  ;;  %v760_v23 = vpop.permute.xlu0 %759 }
 0x24e   : > { %v777_v30 = vsub.f32 %v721_v42, %v760_v23 }
 0x24f   : > { %794 = vst.msk [vmem:[%s2854_s16 + $0x28] sm:$0xff] %vm788_vm2, %v776_v22  ;;  %880 = vperm.xlu0 %2423, %v776_v22  }
 0x250   : > { %795 = vst.msk [vmem:[%s2854_s16 + $0x30] sm:$0xff] %vm788_vm2, %v777_v30  ;;  %v762_v32 = vpop.permute.xlu1 %761 }
 0x251   : > { %v778_v33 = vsub.f32 %v722_v34, %v762_v32 }
 0x253   : > { %796 = vst.msk [vmem:[%s2854_s16 + $0x38] sm:$0xff] %vm788_vm2, %v778_v33  ;;  %890 = vperm.xlu1 %2424, %v778_v33   ;;  %885 = vperm.xlu0 %2423, %v777_v30  }
 0x257   : > { %2426 = vset.pattern.permute.xlu1 %v2522_v28  ;;  %2425 = vset.pattern.permute.xlu0 %v2522_v28 }
 0x258   : > { %940 = vperm.xlu1 %2426, %v926_v35   ;;  %935 = vperm.xlu0 %2425, %v925_v40  }
 0x25c   : > { %945 = vperm.xlu1 %2426, %v927_v41   ;;  %950 = vperm.xlu0 %2425, %v928_v43  }
 0x25e   : > { %v800_v52 = vpop.permute.xlu0 %799 }
 0x25f   : > { %v837_v58 = vmul.f32 %v800_v52, %v2669_v2  ;;  %v838_v59 = vmul.f32 %v800_v52, %v2674_v4 }
 0x260   : > { %955 = vperm.xlu1 %2426, %v929_v44   ;;  %960 = vperm.xlu0 %2425, %v930_v45  }
 0x261   : > { %v805_v49 = vpop.permute.xlu1 %804 }
 0x262   : > { %v820_v54 = vpop.permute.xlu0 %819  ;;  %v839_v56 = vmul.f32 %v805_v49, %v2679_v6  ;;  %v840_v57 = vmul.f32 %v805_v49, %v2682_v7  ;;  %v2436_v49 = vld [vmem:[%s3344_s5 + $0x18] sm:$0xff]  }
 0x263   : > { %v845_v13 = vmul.f32 %v820_v54, %v2717_v26 }
 0x264   : > { %965 = vperm.xlu1 %2426, %v931_v46   ;;  %970 = vperm.xlu0 %2425, %v932_v47  }
 0x265   : > { %v810_v50 = vpop.permute.xlu1 %809 }
 0x266   : > { %v841_v10 = vmul.f32 %v810_v50, %v2695_v14  ;;  %v842_v6 = vmul.f32 %v810_v50, %v2698_v15  ;;  %v846_v14 = vmul.f32 %v820_v54, %v2720_v27 }
 0x268   : > { %2427 = vset.pattern.permute.xlu1 %v2524_v53  ;;  %2428 = vset.pattern.permute.xlu0 %v2524_v53 }
 0x269   : > { %1087 = vperm.xlu1 %2427, %v925_v40   ;;  %1091 = vperm.xlu0 %2428, %v926_v35   ;;  %v815_v51 = vpop.permute.xlu1 %814 }
 0x26a   : > { %v843_v7 = vmul.f32 %v815_v51, %v2663_v0  ;;  %v844_v2 = vmul.f32 %v815_v51, %v2666_v1 }
 0x26d   : > { %1095 = vperm.xlu1 %2427, %v927_v41   ;;  %1103 = vperm.xlu0 %2428, %v929_v44   ;;  %v825_v29 = vpop.permute.xlu1 %824  ;;  %v2433_v44 = vld [vmem:[%s3344_s5 + $0x8] sm:$0xff]  }
 0x26e   : > { %v847_v16 = vmul.f32 %v825_v29, %v2711_v24  ;;  %v848_v15 = vmul.f32 %v825_v29, %v2714_v25 }
 0x271   : > { %1099 = vperm.xlu1 %2427, %v928_v43   ;;  %1111 = vperm.xlu0 %2428, %v931_v46   ;;  %v830_v31 = vpop.permute.xlu1 %829  ;;  %v2435_v46 = vld [vmem:[%s3344_s5 + $0x10] sm:$0xff]  }
 0x272   : > { %v849_v22 = vmul.f32 %v830_v31, %v2741_v38  ;;  %v850_v23 = vmul.f32 %v830_v31, %v2744_v39  ;;  %v2430_v39 = vld [vmem:[%s3343_s4 + $0x8] sm:$0xff]  }
 0x275   : > { %1107 = vperm.xlu1 %2427, %v930_v45   ;;  %v835_v55 = vpop.permute.xlu1 %834  ;;  %v2432_v45 = vld [vmem:[%s3343_s4 + $0x10] sm:$0xff]  }
 0x276   : > { %v851_v26 = vmul.f32 %v835_v55, %v2735_v36  ;;  %v852_v24 = vmul.f32 %v835_v55, %v2738_v37  ;;  %v2429_v36 = vld [vmem:[%s3343_s4] sm:$0xff]  }
 0x277   : > { %v2431_v37 = vld [vmem:[%s3344_s5] sm:$0xff]  }
 0x279   : > { %1115 = vperm.xlu1 %2427, %v932_v47   ;;  %v2434_v47 = vld [vmem:[%s3343_s4 + $0x18] sm:$0xff]  }
 0x2c2   : > { %v861_v34 = vpop.permute.xlu0 %860 }
 0x2c3   : > { %v895_v61 = vadd.f32 %v861_v34, %v839_v56  ;;  %v896_v42 = vadd.f32 %v861_v34, %v840_v57  ;;  %v856_v62 = vpop.permute.xlu1 %855 }
 0x2c4   : > { %v893_v63 = vadd.f32 %v856_v62, %v837_v58  ;;  %v894_v3 = vadd.f32 %v856_v62, %v838_v59 }
 0x2c6   : > { %v909_v8 = vpack.c.bf16 %v895_v61, %v893_v63  ;;  %v910_v9 = vpack.c.bf16 %v896_v42, %v894_v3 }
 0x2c7   : > { %v871_v48 = vpop.permute.xlu1 %870 }
 0x2c8   : > { %1005 = vmatprep.subr.bf16.mxu0 %v910_v9  ;;  %1150 = vmatprep.subr.bf16.mxu1 %v910_v9  ;;  %v899_v53 = vadd.f32 %v871_v48, %v843_v7  ;;  %v900_v60 = vadd.f32 %v871_v48, %v844_v2 }
 0x2c9   : > { %1006 = vmatpush1.bf16.msra.mxu0 %v909_v8  ;;  %1151 = vmatpush1.bf16.msra.mxu1 %v909_v8 }
 0x2ca   : > { %v866_v4 = vpop.permute.xlu0 %865 }
 0x2cb   : > { %v897_v5 = vadd.f32 %v866_v4, %v841_v10  ;;  %v898_v11 = vadd.f32 %v866_v4, %v842_v6  ;;  %v876_v12 = vpop.permute.xlu1 %875 }
 0x2cc   : > { %v901_v18 = vadd.f32 %v876_v12, %v845_v13  ;;  %v902_v19 = vadd.f32 %v876_v12, %v846_v14 }
 0x2cd   : > { %v911_v17 = vpack.c.bf16 %v899_v53, %v897_v5  ;;  %v912_v0 = vpack.c.bf16 %v900_v60, %v898_v11 }
 0x2ce   : > { %v881_v1 = vpop.permute.xlu0 %880 }
 0x2cf   : > { %v903_v20 = vadd.f32 %v881_v1, %v847_v16  ;;  %v904_v21 = vadd.f32 %v881_v1, %v848_v15  ;;  %1007 = vmatprep.subr.bf16.mxu0 %v912_v0  ;;  %1152 = vmatprep.subr.bf16.mxu1 %v912_v0 }
 0x2d0   : > { %1008 = vmatpush1.bf16.msra.mxu0 %v911_v17  ;;  %1153 = vmatpush1.bf16.msra.mxu1 %v911_v17 }
 0x2d1   : > { %v913_v25 = vpack.c.bf16 %v903_v20, %v901_v18  ;;  %v914_v27 = vpack.c.bf16 %v904_v21, %v902_v19 }
 0x2d2   : > { %v891_v30 = vpop.permute.xlu1 %890  ;;  %v886_v32 = vpop.permute.xlu0 %885 }
 0x2d3   : > { %v907_v33 = vadd.f32 %v891_v30, %v851_v26  ;;  %v908_v35 = vadd.f32 %v891_v30, %v852_v24  ;;  %v905_v40 = vadd.f32 %v886_v32, %v849_v22  ;;  %v906_v41 = vadd.f32 %v886_v32, %v850_v23  ;;  %1009 = vmatprep.subr.bf16.mxu0 %v914_v27 }
 0x2d4   : > { %1154 = vmatprep.subr.bf16.mxu1 %v914_v27  ;;  %1010 = vmatpush1.bf16.msra.mxu0 %v913_v25 }
 0x2d5   : > { %v915_v38 = vpack.c.bf16 %v907_v33, %v905_v40  ;;  %v916_v43 = vpack.c.bf16 %v908_v35, %v906_v41  ;;  %1155 = vmatpush1.bf16.msra.mxu1 %v913_v25 }
 0x2d7   : > { %1011 = vmatprep.subr.bf16.mxu0 %v916_v43  ;;  %1156 = vmatprep.subr.bf16.mxu1 %v916_v43  ;;  %v941_v50 = vpop.permute.xlu1 %940  ;;  %v936_v29 = vpop.permute.xlu0 %935 }
 0x2d8   : > { %1012 = vmatpush1.bf16.msra.mxu0 %v915_v38 }
 0x2d9   : > { %1157 = vmatpush1.bf16.msra.mxu1 %v915_v38 }
 0x2db   : > { %2111 = vmatmul.mubr.msk.bf16.vlgmr.msra.gmra.mrb[8].mxu0 %vm440_vm0, %v2429_v36  ;;  %v946_v51 = vpop.permute.xlu1 %945  ;;  %v951_v31 = vpop.permute.xlu0 %950 }
 0x2dc   : > { %1047 = vmatprep.mubr.bf16.mxu0 %v2522_v28  ;;  %2119 = vmatmul.mubr.msk.bf16.vlgmr.msra.gmra.mrb[8].mxu1 %vm440_vm0, %v2431_v37 }
 0x2dd   : > { %1192 = vmatprep.mubr.bf16.mxu1 %v2522_v28 }
 0x2df   : > { %v3018_v52 = vpop.permute.xlu1 %955 }
 0x2e3   : > { %2112 = vmatmul.mubr.msk.bf16.gmra.mrb[12].mxu0 %vm440_vm0, %v2430_v39  ;;  %v3020_v54 = vpop.permute.xlu1 %965 }
 0x2e4   : > { %1057 = vmatprep.mubr.bf16.mxu0 %v2522_v28  ;;  %2120 = vmatmul.mubr.msk.bf16.gmra.mrb[12].mxu1 %vm440_vm0, %v2433_v44 }
 0x2e5   : > { %1202 = vmatprep.mubr.bf16.mxu1 %v2522_v28 }
 0x2e8   : > { %v1088_v55 = vpop.permute.xlu1 %1087 }
 0x2eb   : > { %2113 = vmatmul.mubr.msk.bf16.gmra.mrb[16].mxu0 %vm440_vm0, %v2432_v45 }
 0x2ec   : > { %1067 = vmatprep.mubr.bf16.mxu0 %v2522_v28  ;;  %2121 = vmatmul.mubr.msk.bf16.gmra.mrb[16].mxu1 %vm440_vm0, %v2435_v46  ;;  %v1096_v57 = vpop.permute.xlu1 %1095 }
 0x2ed   : > { %1212 = vmatprep.mubr.bf16.mxu1 %v2522_v28  ;;  %v3022_v28 = vpop.permute.xlu0 %960 }
 0x2f0   : > { %v1100_v14 = vpop.permute.xlu1 %1099 }
 0x2f1   : > { %v3024_v56 = vpop.permute.xlu0 %970 }
 0x2f3   : > { %2114 = vmatmul.mubr.msk.bf16.gmra.mrb[20].mxu0 %vm440_vm0, %v2434_v47 }
 0x2f4   : > { %2122 = vmatmul.mubr.msk.bf16.gmra.mrb[20].mxu1 %vm440_vm0, %v2436_v49  ;;  %v1108_v40 = vpop.permute.xlu1 %1107 }
 0x2f5   : > { %v1092_v59 = vpop.permute.xlu0 %1091 }
 0x2f9   : > { %v1104_v38 = vpop.permute.xlu0 %1103 }
 0x3ae   : > { %v1039_v58 = vpop.f32.mrb[8].mxu0 }
 0x3af   : > { %v1041_v34 = vpop.f32.mrb[9].mxu0  ;;  %v1184_v61 = vpop.f32.mrb[8].mxu1  ;;  %v1040_v3 = vadd.f32 %v1039_v58, %v936_v29 }
 0x3b0   : > { %v1043_v42 = vpop.f32.mrb[10].mxu0  ;;  %v3026_v62 = vadd.f32 %v1184_v61, %v1088_v55  ;;  %v1186_v63 = vpop.f32.mrb[9].mxu1  ;;  %v1042_v6 = vadd.f32 %v1041_v34, %v936_v29 }
 0x3b1   : > { %v1044_v8 = vadd.f32 %v1043_v42, %v941_v50  ;;  %v1045_v9 = vpop.f32.mrb[11].mxu0  ;;  %v3028_v48 = vadd.f32 %v1186_v63, %v1088_v55  ;;  %v1188_v10 = vpop.f32.mrb[10].mxu1 }
 0x3b2   : > { %v1046_v7 = vadd.f32 %v1045_v9, %v941_v50  ;;  %v1190_v2 = vpop.f32.mrb[11].mxu1  ;;  %v3030_v4 = vadd.f32 %v1188_v10, %v1092_v59  ;;  %v1112_v42 = vpop.permute.xlu0 %1111 }
 0x3b3   : > { %v1223_v53 = vpack.c.bf16 %v1044_v8, %v1040_v3  ;;  %v3032_v60 = vadd.f32 %v1190_v2, %v1092_v59  ;;  %v1116_v3 = vpop.permute.xlu1 %1115 }
 0x3b4   : > { %v1224_v5 = vpack.c.bf16 %v1046_v7, %v1042_v6  ;;  %v1584_v11 = vpack.c.bf16 %v3030_v4, %v3026_v62 }
 0x3b5   : > { %1231 = vxpose.xlu0.c.b16.start [1/2] (short) %v1223_v53, 128  ;;  %v1585_v12 = vpack.c.bf16 %v3032_v60, %v3028_v48 }
 0x3b6   : > { %v1049_v13 = vpop.f32.mrb[12].mxu0  ;;  %1247 = vxpose.xlu1.c.b16.start [1/2] (short) %v1224_v5, 128 }
 0x3b7   : > { %v1051_v16 = vpop.f32.mrb[13].mxu0  ;;  %v1194_v15 = vpop.f32.mrb[12].mxu1  ;;  %v1050_v1 = vadd.f32 %v1049_v13, %v946_v51 }
 0x3b8   : > { %v1053_v17 = vpop.f32.mrb[14].mxu0  ;;  %v3038_v0 = vadd.f32 %v1194_v15, %v1096_v57  ;;  %v1196_v18 = vpop.f32.mrb[13].mxu1  ;;  %v1052_v23 = vadd.f32 %v1051_v16, %v946_v51 }
 0x3b9   : > { %v1054_v19 = vadd.f32 %v1053_v17, %v951_v31  ;;  %v1055_v20 = vpop.f32.mrb[15].mxu0  ;;  %v1197_v21 = vadd.f32 %v1196_v18, %v1096_v57  ;;  %v1198_v22 = vpop.f32.mrb[14].mxu1 }
 0x3ba   : > { %v1056_v26 = vadd.f32 %v1055_v20, %v951_v31  ;;  %v1199_v24 = vadd.f32 %v1198_v22, %v1100_v14  ;;  %v1200_v25 = vpop.f32.mrb[15].mxu1 }
 0x3bb   : > { %v1225_v27 = vpack.c.bf16 %v1054_v19, %v1050_v1  ;;  %v1201_v30 = vadd.f32 %v1200_v25, %v1100_v14 }
 0x3bc   : > { %v1226_v32 = vpack.c.bf16 %v1056_v26, %v1052_v23  ;;  %v1586_v33 = vpack.c.bf16 %v1199_v24, %v3038_v0 }
 0x3bd   : > { %1232 = vxpose.xlu0.c.b16.end [2/2] (short) %v1225_v27, 128  ;;  %v1587_v35 = vpack.c.bf16 %v1201_v30, %v1197_v21 }
 0x3be   : > { %v1059_v41 = vpop.f32.mrb[16].mxu0  ;;  %1248 = vxpose.xlu1.c.b16.end [2/2] (short) %v1226_v32, 128 }
 0x3bf   : > { %v1061_v43 = vpop.f32.mrb[17].mxu0  ;;  %v1204_v36 = vpop.f32.mrb[16].mxu1  ;;  %v1060_v45 = vadd.f32 %v1059_v41, %v3018_v52 }
 0x3c0   : > { %v1063_v37 = vpop.f32.mrb[18].mxu0  ;;  %v1206_v39 = vpop.f32.mrb[17].mxu1  ;;  %v1205_v44 = vadd.f32 %v1204_v36, %v1104_v38  ;;  %v1062_v51 = vadd.f32 %v1061_v43, %v3018_v52 }
 0x3c1   : > { %v1064_v46 = vadd.f32 %v1063_v37, %v3022_v28  ;;  %v1065_v47 = vpop.f32.mrb[19].mxu0  ;;  %v1208_v49 = vpop.f32.mrb[18].mxu1  ;;  %v1207_v50 = vadd.f32 %v1206_v39, %v1104_v38 }
 0x3c2   : > { %v1066_v29 = vadd.f32 %v1065_v47, %v3022_v28  ;;  %v1209_v31 = vadd.f32 %v1208_v49, %v1108_v40  ;;  %v1210_v55 = vpop.f32.mrb[19].mxu1 }
 0x3c3   : > { %v1227_v57 = vpack.c.bf16 %v1064_v46, %v1060_v45  ;;  %v1211_v58 = vadd.f32 %v1210_v55, %v1108_v40 }
 0x3c4   : > { %v1228_v59 = vpack.c.bf16 %v1066_v29, %v1062_v51  ;;  %v1588_v34 = vpack.c.bf16 %v1209_v31, %v1205_v44 }
 0x3c5   : > { %v1589_v61 = vpack.c.bf16 %v1211_v58, %v1207_v50 }
 0x3c6   : > { %v1069_v63 = vpop.f32.mrb[20].mxu0 }
 0x3c7   : > { %v1071_v8 = vpop.f32.mrb[21].mxu0  ;;  %v1214_v9 = vpop.f32.mrb[20].mxu1  ;;  %v1070_v2 = vadd.f32 %v1069_v63, %v3020_v54 }
 0x3c8   : > { %v1073_v10 = vpop.f32.mrb[22].mxu0  ;;  %v1216_v6 = vpop.f32.mrb[21].mxu1  ;;  %v1215_v7 = vadd.f32 %v1214_v9, %v1112_v42  ;;  %v1072_v13 = vadd.f32 %v1071_v8, %v3020_v54 }
 0x3c9   : > { %v1074_v52 = vadd.f32 %v1073_v10, %v3024_v56  ;;  %v1075_v28 = vpop.f32.mrb[23].mxu0  ;;  %v1218_v53 = vpop.f32.mrb[22].mxu1  ;;  %v1217_v5 = vadd.f32 %v1216_v6, %v1112_v42 }
 0x3ca   : > { %v1076_v14 = vadd.f32 %v1075_v28, %v3024_v56  ;;  %v1219_v16 = vadd.f32 %v1218_v53, %v1116_v3  ;;  %v1220_v15 = vpop.f32.mrb[23].mxu1 }
 0x3cb   : > { %v1229_v17 = vpack.c.bf16 %v1074_v52, %v1070_v2  ;;  %v1221_v0 = vadd.f32 %v1220_v15, %v1116_v3 }
 0x3cc   : > { %v1230_v18 = vpack.c.bf16 %v1076_v14, %v1072_v13  ;;  %v1590_v1 = vpack.c.bf16 %v1219_v16, %v1215_v7 }
 0x3cd   : > { %v1591_v19 = vpack.c.bf16 %v1221_v0, %v1217_v5 }
 0x3d6   : > { %1592 = vxpose.xlu0.c.b16.start [1/2] (short) %v1584_v11, 128 }
 0x3d7   : > { %1608 = vxpose.xlu1.c.b16.start [1/2] (short) %v1585_v12, 128 }
 0x3da   : > { %1593 = vxpose.xlu0.c.b16.end [2/2] (short) %v1586_v33, 128 }
 0x3db   : > { %1609 = vxpose.xlu1.c.b16.end [2/2] (short) %v1587_v35, 128 }
 0x3f3   : > { %1263 = vxpose.xlu0.c.b16.start [1/2] (short) %v1227_v57, 128 }
 0x3f4   : > { %1279 = vxpose.xlu1.c.b16.start [1/2] (short) %v1228_v59, 128 }
 0x3f7   : > { %1264 = vxpose.xlu0.c.b16.end [2/2] (short) %v1229_v17, 128 }
 0x3f8   : > { %1280 = vxpose.xlu1.c.b16.end [2/2] (short) %v1230_v18, 128 }
 0x410   : > { %1624 = vxpose.xlu0.c.b16.start [1/2] (short) %v1588_v34, 128 }
 0x411   : > { %1640 = vxpose.xlu1.c.b16.start [1/2] (short) %v1589_v61, 128 }
 0x414   : > { %1625 = vxpose.xlu0.c.b16.end [2/2] (short) %v1590_v1, 128 }
 0x415   : > { %1641 = vxpose.xlu1.c.b16.end [2/2] (short) %v1591_v19, 128 }
 0x41f   : > { %v1239_v54 = vpop.trf.xlu0 }
 0x420   : > { %v1255_v56 = vpop.trf.xlu1  ;;  %v2123_v62 = vcombine.low %v1239_v54, %v1239_v54  ;;  %v2124_v48 = vcombine.high %v1239_v54, %v1239_v54 }
 0x421   : > { %v2139_v4 = vcombine.low %v1255_v56, %v1255_v56  ;;  %v2140_v60 = vcombine.high %v1255_v56, %v1255_v56 }
 0x422   : > { %1520 = vst.msk [vmem:[%s3061_s23] sm:$0xf] %vm1519_vm3, %v2123_v62  ;;  %1521 = vst.msk [vmem:[%s3061_s23 + $0x4] sm:$0xf] %vm1519_vm3, %v2124_v48 }
 0x423   : > { %1536 = vst.msk [vmem:[%s3061_s23 + $0x40] sm:$0xf] %vm1519_vm3, %v2139_v4  ;;  %1537 = vst.msk [vmem:[%s3061_s23 + $0x44] sm:$0xf] %vm1519_vm3, %v2140_v60  ;;  %v1240_v11 = vpop.trf.xlu0 }
 0x424   : > { %v1256_v12 = vpop.trf.xlu1  ;;  %v2125_v20 = vcombine.low %v1240_v11, %v1240_v11  ;;  %v2126_v21 = vcombine.high %v1240_v11, %v1240_v11 }
 0x425   : > { %v2141_v22 = vcombine.low %v1256_v12, %v1256_v12  ;;  %v2142_v23 = vcombine.high %v1256_v12, %v1256_v12 }
 0x426   : > { %1522 = vst.msk [vmem:[%s3061_s23 + $0x8] sm:$0xf] %vm1519_vm3, %v2125_v20  ;;  %1523 = vst.msk [vmem:[%s3061_s23 + $0xc] sm:$0xf] %vm1519_vm3, %v2126_v21 }
 0x427   : > { %1538 = vst.msk [vmem:[%s3061_s23 + $0x48] sm:$0xf] %vm1519_vm3, %v2141_v22  ;;  %1539 = vst.msk [vmem:[%s3061_s23 + $0x4c] sm:$0xf] %vm1519_vm3, %v2142_v23  ;;  %v1241_v26 = vpop.trf.xlu0 }
 0x428   : > { %v1257_v24 = vpop.trf.xlu1  ;;  %v2127_v25 = vcombine.low %v1241_v26, %v1241_v26  ;;  %v2128_v27 = vcombine.high %v1241_v26, %v1241_v26 }
 0x429   : > { %v2143_v30 = vcombine.low %v1257_v24, %v1257_v24  ;;  %v2144_v32 = vcombine.high %v1257_v24, %v1257_v24 }
 0x42a   : > { %1524 = vst.msk [vmem:[%s3061_s23 + $0x10] sm:$0xf] %vm1519_vm3, %v2127_v25  ;;  %1525 = vst.msk [vmem:[%s3061_s23 + $0x14] sm:$0xf] %vm1519_vm3, %v2128_v27 }
 0x42b   : > { %1540 = vst.msk [vmem:[%s3061_s23 + $0x50] sm:$0xf] %vm1519_vm3, %v2143_v30  ;;  %1541 = vst.msk [vmem:[%s3061_s23 + $0x54] sm:$0xf] %vm1519_vm3, %v2144_v32  ;;  %v1242_v33 = vpop.trf.xlu0 }
 0x42c   : > { %v1258_v35 = vpop.trf.xlu1  ;;  %v2129_v40 = vcombine.low %v1242_v33, %v1242_v33  ;;  %v2130_v41 = vcombine.high %v1242_v33, %v1242_v33 }
 0x42d   : > { %v2145_v38 = vcombine.low %v1258_v35, %v1258_v35  ;;  %v2146_v43 = vcombine.high %v1258_v35, %v1258_v35 }
 0x42e   : > { %1526 = vst.msk [vmem:[%s3061_s23 + $0x18] sm:$0xf] %vm1519_vm3, %v2129_v40  ;;  %1527 = vst.msk [vmem:[%s3061_s23 + $0x1c] sm:$0xf] %vm1519_vm3, %v2130_v41 }
 0x42f   : > { %1542 = vst.msk [vmem:[%s3061_s23 + $0x58] sm:$0xf] %vm1519_vm3, %v2145_v38  ;;  %1543 = vst.msk [vmem:[%s3061_s23 + $0x5c] sm:$0xf] %vm1519_vm3, %v2146_v43  ;;  %v1243_v36 = vpop.trf.xlu0 }
 0x430   : > { %v1259_v37 = vpop.trf.xlu1  ;;  %v2131_v39 = vcombine.low %v1243_v36, %v1243_v36  ;;  %v2132_v44 = vcombine.high %v1243_v36, %v1243_v36 }
 0x431   : > { %v2147_v45 = vcombine.low %v1259_v37, %v1259_v37  ;;  %v2148_v46 = vcombine.high %v1259_v37, %v1259_v37 }
 0x432   : > { %1528 = vst.msk [vmem:[%s3061_s23 + $0x20] sm:$0xf] %vm1519_vm3, %v2131_v39  ;;  %1529 = vst.msk [vmem:[%s3061_s23 + $0x24] sm:$0xf] %vm1519_vm3, %v2132_v44 }
 0x433   : > { %1544 = vst.msk [vmem:[%s3061_s23 + $0x60] sm:$0xf] %vm1519_vm3, %v2147_v45  ;;  %1545 = vst.msk [vmem:[%s3061_s23 + $0x64] sm:$0xf] %vm1519_vm3, %v2148_v46  ;;  %v1244_v47 = vpop.trf.xlu0 }
 0x434   : > { %v1260_v49 = vpop.trf.xlu1  ;;  %v2133_v50 = vcombine.low %v1244_v47, %v1244_v47  ;;  %v2134_v51 = vcombine.high %v1244_v47, %v1244_v47 }
 0x435   : > { %v2149_v29 = vcombine.low %v1260_v49, %v1260_v49  ;;  %v2150_v31 = vcombine.high %v1260_v49, %v1260_v49 }
 0x436   : > { %1530 = vst.msk [vmem:[%s3061_s23 + $0x28] sm:$0xf] %vm1519_vm3, %v2133_v50  ;;  %1531 = vst.msk [vmem:[%s3061_s23 + $0x2c] sm:$0xf] %vm1519_vm3, %v2134_v51 }
 0x437   : > { %1546 = vst.msk [vmem:[%s3061_s23 + $0x68] sm:$0xf] %vm1519_vm3, %v2149_v29  ;;  %1547 = vst.msk [vmem:[%s3061_s23 + $0x6c] sm:$0xf] %vm1519_vm3, %v2150_v31  ;;  %v1245_v55 = vpop.trf.xlu0 }
 0x438   : > { %v1261_v57 = vpop.trf.xlu1  ;;  %v2135_v58 = vcombine.low %v1245_v55, %v1245_v55  ;;  %v2136_v59 = vcombine.high %v1245_v55, %v1245_v55 }
 0x439   : > { %v2151_v34 = vcombine.low %v1261_v57, %v1261_v57  ;;  %v2152_v61 = vcombine.high %v1261_v57, %v1261_v57 }
 0x43a   : > { %1532 = vst.msk [vmem:[%s3061_s23 + $0x30] sm:$0xf] %vm1519_vm3, %v2135_v58  ;;  %1533 = vst.msk [vmem:[%s3061_s23 + $0x34] sm:$0xf] %vm1519_vm3, %v2136_v59 }
 0x43b   : > { %1548 = vst.msk [vmem:[%s3061_s23 + $0x70] sm:$0xf] %vm1519_vm3, %v2151_v34  ;;  %1549 = vst.msk [vmem:[%s3061_s23 + $0x74] sm:$0xf] %vm1519_vm3, %v2152_v61  ;;  %v1246_v42 = vpop.trf.xlu0 }
 0x43c   : > { %v1262_v63 = vpop.trf.xlu1  ;;  %v2137_v3 = vcombine.low %v1246_v42, %v1246_v42  ;;  %v2138_v8 = vcombine.high %v1246_v42, %v1246_v42 }
 0x43d   : > { %v2153_v9 = vcombine.low %v1262_v63, %v1262_v63  ;;  %v2154_v10 = vcombine.high %v1262_v63, %v1262_v63 }
 0x43e   : > { %1534 = vst.msk [vmem:[%s3061_s23 + $0x38] sm:$0xf] %vm1519_vm3, %v2137_v3  ;;  %1535 = vst.msk [vmem:[%s3061_s23 + $0x3c] sm:$0xf] %vm1519_vm3, %v2138_v8 }
 0x43f   : > { %1550 = vst.msk [vmem:[%s3061_s23 + $0x78] sm:$0xf] %vm1519_vm3, %v2153_v9  ;;  %1551 = vst.msk [vmem:[%s3061_s23 + $0x7c] sm:$0xf] %vm1519_vm3, %v2154_v10  ;;  %v1600_v6 = vpop.trf.xlu0 }
 0x440   : > { %v1616_v7 = vpop.trf.xlu1  ;;  %v2187_v2 = vcombine.low %v1600_v6, %v1600_v6  ;;  %v2188_v52 = vcombine.high %v1600_v6, %v1600_v6 }
 0x441   : > { %v2203_v28 = vcombine.low %v1616_v7, %v1616_v7  ;;  %v2204_v53 = vcombine.high %v1616_v7, %v1616_v7 }
 0x442   : > { %1880 = vst.msk [vmem:[%s3128_s17] sm:$0xf] %vm1519_vm3, %v2187_v2  ;;  %1881 = vst.msk [vmem:[%s3128_s17 + $0x4] sm:$0xf] %vm1519_vm3, %v2188_v52 }
 0x443   : > { %1896 = vst.msk [vmem:[%s3128_s17 + $0x40] sm:$0xf] %vm1519_vm3, %v2203_v28  ;;  %1897 = vst.msk [vmem:[%s3128_s17 + $0x44] sm:$0xf] %vm1519_vm3, %v2204_v53  ;;  %v1601_v5 = vpop.trf.xlu0 }
 0x444   : > { %v1617_v13 = vpop.trf.xlu1  ;;  %v2189_v14 = vcombine.low %v1601_v5, %v1601_v5  ;;  %v2190_v16 = vcombine.high %v1601_v5, %v1601_v5 }
 0x445   : > { %v2205_v15 = vcombine.low %v1617_v13, %v1617_v13  ;;  %v2206_v17 = vcombine.high %v1617_v13, %v1617_v13 }
 0x446   : > { %1882 = vst.msk [vmem:[%s3128_s17 + $0x8] sm:$0xf] %vm1519_vm3, %v2189_v14  ;;  %1883 = vst.msk [vmem:[%s3128_s17 + $0xc] sm:$0xf] %vm1519_vm3, %v2190_v16 }
 0x447   : > { %1898 = vst.msk [vmem:[%s3128_s17 + $0x48] sm:$0xf] %vm1519_vm3, %v2205_v15  ;;  %1899 = vst.msk [vmem:[%s3128_s17 + $0x4c] sm:$0xf] %vm1519_vm3, %v2206_v17  ;;  %v1602_v0 = vpop.trf.xlu0 }
 0x448   : > { %v1618_v18 = vpop.trf.xlu1  ;;  %v2191_v1 = vcombine.low %v1602_v0, %v1602_v0  ;;  %v2192_v19 = vcombine.high %v1602_v0, %v1602_v0 }
 0x449   : > { %v2207_v54 = vcombine.low %v1618_v18, %v1618_v18  ;;  %v2208_v56 = vcombine.high %v1618_v18, %v1618_v18 }
 0x44a   : > { %1884 = vst.msk [vmem:[%s3128_s17 + $0x10] sm:$0xf] %vm1519_vm3, %v2191_v1  ;;  %1885 = vst.msk [vmem:[%s3128_s17 + $0x14] sm:$0xf] %vm1519_vm3, %v2192_v19 }
 0x44b   : > { %1900 = vst.msk [vmem:[%s3128_s17 + $0x50] sm:$0xf] %vm1519_vm3, %v2207_v54  ;;  %1901 = vst.msk [vmem:[%s3128_s17 + $0x54] sm:$0xf] %vm1519_vm3, %v2208_v56  ;;  %v1603_v62 = vpop.trf.xlu0 }
 0x44c   : > { %v1619_v48 = vpop.trf.xlu1  ;;  %v2193_v4 = vcombine.low %v1603_v62, %v1603_v62  ;;  %v2194_v60 = vcombine.high %v1603_v62, %v1603_v62 }
 0x44d   : > { %v2209_v11 = vcombine.low %v1619_v48, %v1619_v48  ;;  %v2210_v12 = vcombine.high %v1619_v48, %v1619_v48 }
 0x44e   : > { %1886 = vst.msk [vmem:[%s3128_s17 + $0x18] sm:$0xf] %vm1519_vm3, %v2193_v4  ;;  %1887 = vst.msk [vmem:[%s3128_s17 + $0x1c] sm:$0xf] %vm1519_vm3, %v2194_v60 }
 0x44f   : > { %1902 = vst.msk [vmem:[%s3128_s17 + $0x58] sm:$0xf] %vm1519_vm3, %v2209_v11  ;;  %1903 = vst.msk [vmem:[%s3128_s17 + $0x5c] sm:$0xf] %vm1519_vm3, %v2210_v12  ;;  %v1604_v20 = vpop.trf.xlu0 }
 0x450   : > { %v1620_v21 = vpop.trf.xlu1  ;;  %v2195_v22 = vcombine.low %v1604_v20, %v1604_v20  ;;  %v2196_v23 = vcombine.high %v1604_v20, %v1604_v20 }
 0x451   : > { %v2211_v26 = vcombine.low %v1620_v21, %v1620_v21  ;;  %v2212_v24 = vcombine.high %v1620_v21, %v1620_v21 }
 0x452   : > { %1888 = vst.msk [vmem:[%s3128_s17 + $0x20] sm:$0xf] %vm1519_vm3, %v2195_v22  ;;  %1889 = vst.msk [vmem:[%s3128_s17 + $0x24] sm:$0xf] %vm1519_vm3, %v2196_v23 }
 0x453   : > { %1904 = vst.msk [vmem:[%s3128_s17 + $0x60] sm:$0xf] %vm1519_vm3, %v2211_v26  ;;  %1905 = vst.msk [vmem:[%s3128_s17 + $0x64] sm:$0xf] %vm1519_vm3, %v2212_v24  ;;  %v1605_v25 = vpop.trf.xlu0 }
 0x454   : > { %v1621_v27 = vpop.trf.xlu1  ;;  %v2197_v30 = vcombine.low %v1605_v25, %v1605_v25  ;;  %v2198_v32 = vcombine.high %v1605_v25, %v1605_v25 }
 0x455   : > { %v2213_v33 = vcombine.low %v1621_v27, %v1621_v27  ;;  %v2214_v35 = vcombine.high %v1621_v27, %v1621_v27 }
 0x456   : > { %1890 = vst.msk [vmem:[%s3128_s17 + $0x28] sm:$0xf] %vm1519_vm3, %v2197_v30  ;;  %1891 = vst.msk [vmem:[%s3128_s17 + $0x2c] sm:$0xf] %vm1519_vm3, %v2198_v32 }
 0x457   : > { %1906 = vst.msk [vmem:[%s3128_s17 + $0x68] sm:$0xf] %vm1519_vm3, %v2213_v33  ;;  %1907 = vst.msk [vmem:[%s3128_s17 + $0x6c] sm:$0xf] %vm1519_vm3, %v2214_v35  ;;  %v1606_v40 = vpop.trf.xlu0 }
 0x458   : > { %v1622_v41 = vpop.trf.xlu1  ;;  %v2199_v38 = vcombine.low %v1606_v40, %v1606_v40  ;;  %v2200_v43 = vcombine.high %v1606_v40, %v1606_v40 }
 0x459   : > { %v2215_v36 = vcombine.low %v1622_v41, %v1622_v41  ;;  %v2216_v37 = vcombine.high %v1622_v41, %v1622_v41 }
 0x45a   : > { %1892 = vst.msk [vmem:[%s3128_s17 + $0x30] sm:$0xf] %vm1519_vm3, %v2199_v38  ;;  %1893 = vst.msk [vmem:[%s3128_s17 + $0x34] sm:$0xf] %vm1519_vm3, %v2200_v43 }
 0x45b   : > { %1908 = vst.msk [vmem:[%s3128_s17 + $0x70] sm:$0xf] %vm1519_vm3, %v2215_v36  ;;  %1909 = vst.msk [vmem:[%s3128_s17 + $0x74] sm:$0xf] %vm1519_vm3, %v2216_v37  ;;  %v1607_v39 = vpop.trf.xlu0 }
 0x45c   : > { %v1623_v44 = vpop.trf.xlu1  ;;  %v2201_v45 = vcombine.low %v1607_v39, %v1607_v39  ;;  %v2202_v46 = vcombine.high %v1607_v39, %v1607_v39 }
 0x45d   : > { %v2217_v47 = vcombine.low %v1623_v44, %v1623_v44  ;;  %v2218_v49 = vcombine.high %v1623_v44, %v1623_v44 }
 0x45e   : > { %1894 = vst.msk [vmem:[%s3128_s17 + $0x38] sm:$0xf] %vm1519_vm3, %v2201_v45  ;;  %1895 = vst.msk [vmem:[%s3128_s17 + $0x3c] sm:$0xf] %vm1519_vm3, %v2202_v46 }
 0x45f   : > { %1910 = vst.msk [vmem:[%s3128_s17 + $0x78] sm:$0xf] %vm1519_vm3, %v2217_v47  ;;  %1911 = vst.msk [vmem:[%s3128_s17 + $0x7c] sm:$0xf] %vm1519_vm3, %v2218_v49  ;;  %v1271_v50 = vpop.trf.xlu0 }
 0x460   : > { %v1287_v51 = vpop.trf.xlu1  ;;  %v2155_v29 = vcombine.low %v1271_v50, %v1271_v50  ;;  %v2156_v31 = vcombine.high %v1271_v50, %v1271_v50 }
 0x461   : > { %v2171_v55 = vcombine.low %v1287_v51, %v1287_v51  ;;  %v2172_v57 = vcombine.high %v1287_v51, %v1287_v51 }
 0x462   : > { %1552 = vst.msk [vmem:[%s3061_s23 + $0x80] sm:$0xf] %vm1519_vm3, %v2155_v29  ;;  %1553 = vst.msk [vmem:[%s3061_s23 + $0x84] sm:$0xf] %vm1519_vm3, %v2156_v31 }
 0x463   : > { %1568 = vst.msk [vmem:[%s3061_s23 + $0xc0] sm:$0xf] %vm1519_vm3, %v2171_v55  ;;  %1569 = vst.msk [vmem:[%s3061_s23 + $0xc4] sm:$0xf] %vm1519_vm3, %v2172_v57  ;;  %v1272_v58 = vpop.trf.xlu0 }
 0x464   : > { %v1288_v59 = vpop.trf.xlu1  ;;  %v2157_v34 = vcombine.low %v1272_v58, %v1272_v58  ;;  %v2158_v61 = vcombine.high %v1272_v58, %v1272_v58 }
 0x465   : > { %v2173_v42 = vcombine.low %v1288_v59, %v1288_v59  ;;  %v2174_v63 = vcombine.high %v1288_v59, %v1288_v59 }
 0x466   : > { %1554 = vst.msk [vmem:[%s3061_s23 + $0x88] sm:$0xf] %vm1519_vm3, %v2157_v34  ;;  %1555 = vst.msk [vmem:[%s3061_s23 + $0x8c] sm:$0xf] %vm1519_vm3, %v2158_v61 }
 0x467   : > { %1570 = vst.msk [vmem:[%s3061_s23 + $0xc8] sm:$0xf] %vm1519_vm3, %v2173_v42  ;;  %1571 = vst.msk [vmem:[%s3061_s23 + $0xcc] sm:$0xf] %vm1519_vm3, %v2174_v63  ;;  %v1273_v3 = vpop.trf.xlu0 }
 0x468   : > { %v1289_v8 = vpop.trf.xlu1  ;;  %v2159_v9 = vcombine.low %v1273_v3, %v1273_v3  ;;  %v2160_v10 = vcombine.high %v1273_v3, %v1273_v3 }
 0x469   : > { %v2175_v6 = vcombine.low %v1289_v8, %v1289_v8  ;;  %v2176_v7 = vcombine.high %v1289_v8, %v1289_v8 }
 0x46a   : > { %1556 = vst.msk [vmem:[%s3061_s23 + $0x90] sm:$0xf] %vm1519_vm3, %v2159_v9  ;;  %1557 = vst.msk [vmem:[%s3061_s23 + $0x94] sm:$0xf] %vm1519_vm3, %v2160_v10 }
 0x46b   : > { %1572 = vst.msk [vmem:[%s3061_s23 + $0xd0] sm:$0xf] %vm1519_vm3, %v2175_v6  ;;  %1573 = vst.msk [vmem:[%s3061_s23 + $0xd4] sm:$0xf] %vm1519_vm3, %v2176_v7  ;;  %v1274_v2 = vpop.trf.xlu0 }
 0x46c   : > { %v1290_v52 = vpop.trf.xlu1  ;;  %v2161_v28 = vcombine.low %v1274_v2, %v1274_v2  ;;  %v2162_v53 = vcombine.high %v1274_v2, %v1274_v2 }
 0x46d   : > { %v2177_v5 = vcombine.low %v1290_v52, %v1290_v52  ;;  %v2178_v13 = vcombine.high %v1290_v52, %v1290_v52 }
 0x46e   : > { %1558 = vst.msk [vmem:[%s3061_s23 + $0x98] sm:$0xf] %vm1519_vm3, %v2161_v28  ;;  %1559 = vst.msk [vmem:[%s3061_s23 + $0x9c] sm:$0xf] %vm1519_vm3, %v2162_v53 }
 0x46f   : > { %1574 = vst.msk [vmem:[%s3061_s23 + $0xd8] sm:$0xf] %vm1519_vm3, %v2177_v5  ;;  %1575 = vst.msk [vmem:[%s3061_s23 + $0xdc] sm:$0xf] %vm1519_vm3, %v2178_v13  ;;  %v1275_v14 = vpop.trf.xlu0 }
 0x470   : > { %v1291_v16 = vpop.trf.xlu1  ;;  %v2163_v15 = vcombine.low %v1275_v14, %v1275_v14  ;;  %v2164_v17 = vcombine.high %v1275_v14, %v1275_v14 }
 0x471   : > { %v2179_v0 = vcombine.low %v1291_v16, %v1291_v16  ;;  %v2180_v18 = vcombine.high %v1291_v16, %v1291_v16 }
 0x472   : > { %1560 = vst.msk [vmem:[%s3061_s23 + $0xa0] sm:$0xf] %vm1519_vm3, %v2163_v15  ;;  %1561 = vst.msk [vmem:[%s3061_s23 + $0xa4] sm:$0xf] %vm1519_vm3, %v2164_v17 }
 0x473   : > { %1576 = vst.msk [vmem:[%s3061_s23 + $0xe0] sm:$0xf] %vm1519_vm3, %v2179_v0  ;;  %1577 = vst.msk [vmem:[%s3061_s23 + $0xe4] sm:$0xf] %vm1519_vm3, %v2180_v18  ;;  %v1276_v1 = vpop.trf.xlu0 }
 0x474   : > { %v1292_v19 = vpop.trf.xlu1  ;;  %v2165_v54 = vcombine.low %v1276_v1, %v1276_v1  ;;  %v2166_v56 = vcombine.high %v1276_v1, %v1276_v1 }
 0x475   : > { %v2181_v62 = vcombine.low %v1292_v19, %v1292_v19  ;;  %v2182_v48 = vcombine.high %v1292_v19, %v1292_v19 }
 0x476   : > { %1562 = vst.msk [vmem:[%s3061_s23 + $0xa8] sm:$0xf] %vm1519_vm3, %v2165_v54  ;;  %1563 = vst.msk [vmem:[%s3061_s23 + $0xac] sm:$0xf] %vm1519_vm3, %v2166_v56 }
 0x477   : > { %1578 = vst.msk [vmem:[%s3061_s23 + $0xe8] sm:$0xf] %vm1519_vm3, %v2181_v62  ;;  %1579 = vst.msk [vmem:[%s3061_s23 + $0xec] sm:$0xf] %vm1519_vm3, %v2182_v48  ;;  %v1277_v4 = vpop.trf.xlu0 }
 0x478   : > { %v1293_v60 = vpop.trf.xlu1  ;;  %v2167_v11 = vcombine.low %v1277_v4, %v1277_v4  ;;  %v2168_v12 = vcombine.high %v1277_v4, %v1277_v4 }
 0x479   : > { %v2183_v20 = vcombine.low %v1293_v60, %v1293_v60  ;;  %v2184_v21 = vcombine.high %v1293_v60, %v1293_v60 }
 0x47a   : > { %1564 = vst.msk [vmem:[%s3061_s23 + $0xb0] sm:$0xf] %vm1519_vm3, %v2167_v11  ;;  %1565 = vst.msk [vmem:[%s3061_s23 + $0xb4] sm:$0xf] %vm1519_vm3, %v2168_v12 }
 0x47b   : > { %1580 = vst.msk [vmem:[%s3061_s23 + $0xf0] sm:$0xf] %vm1519_vm3, %v2183_v20  ;;  %1581 = vst.msk [vmem:[%s3061_s23 + $0xf4] sm:$0xf] %vm1519_vm3, %v2184_v21  ;;  %v1278_v22 = vpop.trf.xlu0 }
 0x47c   : > { %v1294_v23 = vpop.trf.xlu1  ;;  %v2169_v26 = vcombine.low %v1278_v22, %v1278_v22  ;;  %v2170_v24 = vcombine.high %v1278_v22, %v1278_v22 }
 0x47d   : > { %v2185_v25 = vcombine.low %v1294_v23, %v1294_v23  ;;  %v2186_v27 = vcombine.high %v1294_v23, %v1294_v23 }
 0x47e   : > { %1566 = vst.msk [vmem:[%s3061_s23 + $0xb8] sm:$0xf] %vm1519_vm3, %v2169_v26  ;;  %1567 = vst.msk [vmem:[%s3061_s23 + $0xbc] sm:$0xf] %vm1519_vm3, %v2170_v24 }
 0x47f   : > { %1582 = vst.msk [vmem:[%s3061_s23 + $0xf8] sm:$0xf] %vm1519_vm3, %v2185_v25  ;;  %1583 = vst.msk [vmem:[%s3061_s23 + $0xfc] sm:$0xf] %vm1519_vm3, %v2186_v27  ;;  %v1632_v30 = vpop.trf.xlu0 }
 0x480   : > { %v1648_v32 = vpop.trf.xlu1  ;;  %v2219_v33 = vcombine.low %v1632_v30, %v1632_v30  ;;  %v2220_v35 = vcombine.high %v1632_v30, %v1632_v30 }
 0x481   : > { %v2235_v40 = vcombine.low %v1648_v32, %v1648_v32  ;;  %v2236_v41 = vcombine.high %v1648_v32, %v1648_v32 }
 0x482   : > { %1912 = vst.msk [vmem:[%s3128_s17 + $0x80] sm:$0xf] %vm1519_vm3, %v2219_v33  ;;  %1913 = vst.msk [vmem:[%s3128_s17 + $0x84] sm:$0xf] %vm1519_vm3, %v2220_v35 }
 0x483   : > { %1928 = vst.msk [vmem:[%s3128_s17 + $0xc0] sm:$0xf] %vm1519_vm3, %v2235_v40  ;;  %1929 = vst.msk [vmem:[%s3128_s17 + $0xc4] sm:$0xf] %vm1519_vm3, %v2236_v41  ;;  %v1633_v38 = vpop.trf.xlu0 }
 0x484   : > { %v1649_v43 = vpop.trf.xlu1  ;;  %v2221_v36 = vcombine.low %v1633_v38, %v1633_v38  ;;  %v2222_v37 = vcombine.high %v1633_v38, %v1633_v38 }
 0x485   : > { %v2237_v39 = vcombine.low %v1649_v43, %v1649_v43  ;;  %v2238_v44 = vcombine.high %v1649_v43, %v1649_v43 }
 0x486   : > { %1914 = vst.msk [vmem:[%s3128_s17 + $0x88] sm:$0xf] %vm1519_vm3, %v2221_v36  ;;  %1915 = vst.msk [vmem:[%s3128_s17 + $0x8c] sm:$0xf] %vm1519_vm3, %v2222_v37 }
 0x487   : > { %1930 = vst.msk [vmem:[%s3128_s17 + $0xc8] sm:$0xf] %vm1519_vm3, %v2237_v39  ;;  %1931 = vst.msk [vmem:[%s3128_s17 + $0xcc] sm:$0xf] %vm1519_vm3, %v2238_v44  ;;  %v1634_v45 = vpop.trf.xlu0 }
 0x488   : > { %v1650_v46 = vpop.trf.xlu1  ;;  %v2223_v47 = vcombine.low %v1634_v45, %v1634_v45  ;;  %v2224_v49 = vcombine.high %v1634_v45, %v1634_v45 }
 0x489   : > { %v2239_v50 = vcombine.low %v1650_v46, %v1650_v46  ;;  %v2240_v51 = vcombine.high %v1650_v46, %v1650_v46 }
 0x48a   : > { %1916 = vst.msk [vmem:[%s3128_s17 + $0x90] sm:$0xf] %vm1519_vm3, %v2223_v47  ;;  %1917 = vst.msk [vmem:[%s3128_s17 + $0x94] sm:$0xf] %vm1519_vm3, %v2224_v49 }
 0x48b   : > { %1932 = vst.msk [vmem:[%s3128_s17 + $0xd0] sm:$0xf] %vm1519_vm3, %v2239_v50  ;;  %1933 = vst.msk [vmem:[%s3128_s17 + $0xd4] sm:$0xf] %vm1519_vm3, %v2240_v51  ;;  %v1635_v29 = vpop.trf.xlu0 }
 0x48c   : > { %v1651_v31 = vpop.trf.xlu1  ;;  %v2225_v55 = vcombine.low %v1635_v29, %v1635_v29  ;;  %v2226_v57 = vcombine.high %v1635_v29, %v1635_v29 }
 0x48d   : > { %v2241_v58 = vcombine.low %v1651_v31, %v1651_v31  ;;  %v2242_v59 = vcombine.high %v1651_v31, %v1651_v31 }
 0x48e   : > { %1918 = vst.msk [vmem:[%s3128_s17 + $0x98] sm:$0xf] %vm1519_vm3, %v2225_v55  ;;  %1919 = vst.msk [vmem:[%s3128_s17 + $0x9c] sm:$0xf] %vm1519_vm3, %v2226_v57 }
 0x48f   : > { %1934 = vst.msk [vmem:[%s3128_s17 + $0xd8] sm:$0xf] %vm1519_vm3, %v2241_v58  ;;  %1935 = vst.msk [vmem:[%s3128_s17 + $0xdc] sm:$0xf] %vm1519_vm3, %v2242_v59  ;;  %v1636_v34 = vpop.trf.xlu0 }
 0x490   : > { %v1652_v61 = vpop.trf.xlu1  ;;  %v2227_v42 = vcombine.low %v1636_v34, %v1636_v34  ;;  %v2228_v63 = vcombine.high %v1636_v34, %v1636_v34 }
 0x491   : > { %v2243_v3 = vcombine.low %v1652_v61, %v1652_v61  ;;  %v2244_v8 = vcombine.high %v1652_v61, %v1652_v61 }
 0x492   : > { %1920 = vst.msk [vmem:[%s3128_s17 + $0xa0] sm:$0xf] %vm1519_vm3, %v2227_v42  ;;  %1921 = vst.msk [vmem:[%s3128_s17 + $0xa4] sm:$0xf] %vm1519_vm3, %v2228_v63 }
 0x493   : > { %1936 = vst.msk [vmem:[%s3128_s17 + $0xe0] sm:$0xf] %vm1519_vm3, %v2243_v3  ;;  %1937 = vst.msk [vmem:[%s3128_s17 + $0xe4] sm:$0xf] %vm1519_vm3, %v2244_v8  ;;  %v1637_v9 = vpop.trf.xlu0 }
 0x494   : > { %v1653_v10 = vpop.trf.xlu1  ;;  %v2229_v6 = vcombine.low %v1637_v9, %v1637_v9  ;;  %v2230_v7 = vcombine.high %v1637_v9, %v1637_v9 }
 0x495   : > { %v2245_v2 = vcombine.low %v1653_v10, %v1653_v10  ;;  %v2246_v52 = vcombine.high %v1653_v10, %v1653_v10 }
 0x496   : > { %1922 = vst.msk [vmem:[%s3128_s17 + $0xa8] sm:$0xf] %vm1519_vm3, %v2229_v6  ;;  %1923 = vst.msk [vmem:[%s3128_s17 + $0xac] sm:$0xf] %vm1519_vm3, %v2230_v7 }
 0x497   : > { %1938 = vst.msk [vmem:[%s3128_s17 + $0xe8] sm:$0xf] %vm1519_vm3, %v2245_v2  ;;  %1939 = vst.msk [vmem:[%s3128_s17 + $0xec] sm:$0xf] %vm1519_vm3, %v2246_v52  ;;  %v1638_v28 = vpop.trf.xlu0 }
 0x498   : > { %v1654_v53 = vpop.trf.xlu1  ;;  %v2231_v5 = vcombine.low %v1638_v28, %v1638_v28  ;;  %v2232_v13 = vcombine.high %v1638_v28, %v1638_v28 }
 0x499   : > { %v2247_v14 = vcombine.low %v1654_v53, %v1654_v53  ;;  %v2248_v16 = vcombine.high %v1654_v53, %v1654_v53 }
 0x49a   : > { %1924 = vst.msk [vmem:[%s3128_s17 + $0xb0] sm:$0xf] %vm1519_vm3, %v2231_v5  ;;  %1925 = vst.msk [vmem:[%s3128_s17 + $0xb4] sm:$0xf] %vm1519_vm3, %v2232_v13 }
 0x49b   : > { %1940 = vst.msk [vmem:[%s3128_s17 + $0xf0] sm:$0xf] %vm1519_vm3, %v2247_v14  ;;  %1941 = vst.msk [vmem:[%s3128_s17 + $0xf4] sm:$0xf] %vm1519_vm3, %v2248_v16  ;;  %v1639_v15 = vpop.trf.xlu0 }
 0x49c   : > { %v1655_v17 = vpop.trf.xlu1  ;;  %v2233_v0 = vcombine.low %v1639_v15, %v1639_v15  ;;  %v2234_v18 = vcombine.high %v1639_v15, %v1639_v15 }
 0x49d   : > { %v2249_v1 = vcombine.low %v1655_v17, %v1655_v17  ;;  %v2250_v19 = vcombine.high %v1655_v17, %v1655_v17 }
 0x49e   : > { %1926 = vst.msk [vmem:[%s3128_s17 + $0xb8] sm:$0xf] %vm1519_vm3, %v2233_v0  ;;  %1927 = vst.msk [vmem:[%s3128_s17 + $0xbc] sm:$0xf] %vm1519_vm3, %v2234_v18 }
 0x49f   : > { %1942 = vst.msk [vmem:[%s3128_s17 + $0xf8] sm:$0xf] %vm1519_vm3, %v2249_v1  ;;  %1943 = vst.msk [vmem:[%s3128_s17 + $0xfc] sm:$0xf] %vm1519_vm3, %v2250_v19 }
 0x4a0 PF: > { %p19_p8 = scmp.ge.s32.totalorder %s2592_s10, 4   ;;  %s3351_s27 = smov %s2509_s28 }
 0x4a1   : > { %s3352_s28 = smov %s2513_s29  ;;  %s3353_s29 = smov %s2602_s13 }
 0x4a2   : > { %s3354_s30 = smov %s2592_s10  ;;  %21 = sbr.rel (!%p19_p8) target bundleno = 3 (0x3), region = 108 }
 0x4a9   :  { %1997 = vsyncpa [#allocation3], 1 }
 0x4aa   :  { %1999 = vsyncpa [#allocation3 + $0x1], 1 }

</bundles_post_ra>
